<compile_context>
chip_gen: v5e
topology: v5e:2x2
jax: 0.10.0
libtpu: 0.0.40
codegen_flags: <defaults>
</compile_context>

<pallas_src>
import jax
import jax.numpy as jnp
import numpy as np
from jax.experimental import pallas as pl
from jax.experimental.pallas import tpu as pltpu  # noqa: F401  (TPU backend; params not needed at these shapes)

BN_EPS = 1e-5


# ---------------------------------------------------------------------------
# Fused kernel: 3 x (GCN -> folded-BN bias -> ReLU) + FC head, all resident in VMEM.
# ---------------------------------------------------------------------------
def fused_gcn_kernel(a_ref, x_ref,
                     w1_ref, b1_ref, w2_ref, b2_ref, w3_ref, b3_ref,
                     wfc_ref, bfc_ref, o_ref):
    a = a_ref[...]          # [N, N] bf16 sym-normalized adjacency (with self loops)
    h = x_ref[...]          # [N, F] bf16 node features

    def gcn_layer(h_bf16, w_ref, b_ref):
        # Feature transform computed exactly once: H @ W   (MXU, bf16 x bf16 -> f32 acc)
        xw = jnp.dot(h_bf16, w_ref[...], preferred_element_type=jnp.float32)
        # Neighborhood aggregation: A_hat @ (H W)           (MXU)
        agg = jnp.dot(a, xw.astype(jnp.bfloat16), preferred_element_type=jnp.float32)
        # Folded eval-mode BatchNorm bias + ReLU (dropout is identity in eval mode).
        return jnp.maximum(agg + b_ref[...], 0.0)

    h = gcn_layer(h, w1_ref, b1_ref).astype(jnp.bfloat16)
    h = gcn_layer(h, w2_ref, b2_ref).astype(jnp.bfloat16)
    h = gcn_layer(h, w3_ref, b3_ref).astype(jnp.bfloat16)

    # FC head (output_dim == 1) fused into the epilogue as a VPU multiply + lane
    # reduction — avoids a separate launch whose output block would be (tm, 1).
    out = jnp.sum(h.astype(jnp.float32) * wfc_ref[...], axis=1, keepdims=True)
    o_ref[...] = (out + bfc_ref[...]).astype(o_ref.dtype)


# ---------------------------------------------------------------------------
# Host-side helpers (plain JAX glue, not the hot path)
# ---------------------------------------------------------------------------
def fold_bn_into_linear(w, b, gamma, beta, mean, var):
    """Fold eval-mode BatchNorm1d into the preceding linear transform."""
    s = gamma * jax.lax.rsqrt(var + BN_EPS)
    return w * s[None, :], (b - mean) * s + beta


def build_gcn_norm_adj(edge_index, num_nodes):
    """PyG-style gcn_norm -> dense A_hat[dst, src] with self loops."""
    src, dst = edge_index[0], edge_index[1]
    loop = jnp.arange(num_nodes, dtype=src.dtype)
    src = jnp.concatenate([src, loop])
    dst = jnp.concatenate([dst, loop])
    a = jnp.zeros((num_nodes, num_nodes), jnp.float32).at[dst, src].add(1.0)
    deg = a.sum(axis=1)
    dinv = jnp.where(deg > 0, jax.lax.rsqrt(deg), 0.0)
    return dinv[:, None] * a * dinv[None, :]


# ---------------------------------------------------------------------------
# Full model forward (single fused pallas_call)
# ---------------------------------------------------------------------------
def gcn_recommendation_forward(x, a_hat, params):
    n, f_in = x.shape
    hdim = params["conv1"]["w"].shape[1]
    out_dim = params["fc"]["w"].shape[1]
    assert out_dim == 1, "FC head is specialized to output_dim == 1 (as in the spec)"

    folded_w, folded_b = [], []
    for k in (1, 2, 3):
        p, bn = params[f"conv{k}"], params[f"bn{k}"]
        wf, bf = fold_bn_into_linear(p["w"], p["b"],
                                     bn["gamma"], bn["beta"], bn["mean"], bn["var"])
        folded_w.append(wf.astype(jnp.bfloat16))          # bf16 MXU operand
        folded_b.append(bf.reshape(1, hdim).astype(jnp.float32))

    wfc_row = params["fc"]["w"][:, 0].reshape(1, hdim).astype(jnp.float32)
    bfc = params["fc"]["b"].reshape(1, out_dim).astype(jnp.float32)

    # Advisory cost estimate for XLA's scheduler.
    flops = 2 * n * f_in * hdim + 2 * n * n * hdim            # layer 1
    flops += 2 * (2 * n * hdim * hdim + 2 * n * n * hdim)     # layers 2, 3
    flops += 2 * n * hdim                                     # fc head
    bytes_accessed = 2 * (n * n + n * f_in)                   # bf16 A_hat, X
    bytes_accessed += 2 * (f_in * hdim + 2 * hdim * hdim)     # bf16 weights
    bytes_accessed += 4 * (3 * hdim + hdim + out_dim)         # f32 biases + fc row
    bytes_accessed += 4 * n * out_dim                         # f32 output

    return pl.pallas_call(
        fused_gcn_kernel,
        out_shape=jax.ShapeDtypeStruct((n, out_dim), jnp.float32),
        cost_estimate=pl.CostEstimate(flops=int(flops), transcendentals=0,
                                      bytes_accessed=int(bytes_accessed)),
    )(a_hat.astype(jnp.bfloat16), x.astype(jnp.bfloat16),
      folded_w[0], folded_b[0], folded_w[1], folded_b[1], folded_w[2], folded_b[2],
      wfc_row, bfc)


# ---------------------------------------------------------------------------
# Pure-JAX reference (mirrors the kernel's bf16 MXU-operand quantization so the
# comparison isolates kernel correctness from bf16 input rounding).
# ---------------------------------------------------------------------------
def reference_forward(x, a_hat, params):
    q = lambda v: v.astype(jnp.bfloat16).astype(jnp.float32)
    a = q(a_hat)
    h = q(x)
    for k in (1, 2, 3):
        p, bn = params[f"conv{k}"], params[f"bn{k}"]
        wf, bf = fold_bn_into_linear(p["w"], p["b"],
                                     bn["gamma"], bn["beta"], bn["mean"], bn["var"])
        xw = q(h @ q(wf))
        h = q(jnp.maximum(a @ xw + bf[None, :], 0.0))
    wfc = params["fc"]["w"][:, 0]
    return (h * wfc[None, :]).sum(axis=1, keepdims=True) + params["fc"]["b"][None, :]


def init_params(key, input_dim, hidden_dim, output_dim):
    keys = iter(jax.random.split(key, 20))   # 3 * (2 conv + 4 bn) + 2 fc = 20 keys
    params = {}
    dims = [(input_dim, hidden_dim), (hidden_dim, hidden_dim), (hidden_dim, hidden_dim)]
    for k, (din, dout) in enumerate(dims, start=1):
        params[f"conv{k}"] = {
            "w": jax.random.normal(next(keys), (din, dout), jnp.float32) * 0.1,
            "b": jax.random.normal(next(keys), (dout,), jnp.float32) * 0.1,
        }
        params[f"bn{k}"] = {
            "gamma": 1.0 + 0.1 * jax.random.normal(next(keys), (dout,), jnp.float32),
            "beta": 0.1 * jax.random.normal(next(keys), (dout,), jnp.float32),
            "mean": 0.1 * jax.random.normal(next(keys), (dout,), jnp.float32),
            "var": jax.random.uniform(next(keys), (dout,), jnp.float32, 0.5, 1.5),
        }
    params["fc"] = {
        "w": jax.random.normal(next(keys), (hidden_dim, output_dim), jnp.float32) * 0.1,
        "b": jax.random.normal(next(keys), (output_dim,), jnp.float32) * 0.1,
    }
    return params


if __name__ == "__main__":
    key = jax.random.PRNGKey(0)

    # Small synthetic bipartite user/movie graph (mirrors the ratings.csv construction).
    num_users, num_movies = 128, 128
    total_nodes = num_users + num_movies      # N = 256
    input_dim = total_nodes                   # identity node features
    hidden_dim = 128                          # as in the original spec (lane/MXU aligned)
    output_dim = 1
    num_edges = 1024

    k_e1, k_e2, k_p = jax.random.split(key, 3)
    user_ids = jax.random.randint(k_e1, (num_edges,), 0, num_users)
    movie_ids = jax.random.randint(k_e2, (num_edges,), 0, num_movies) + num_users
    edge_index = jnp.stack([user_ids, movie_ids]).astype(jnp.int32)   # [2, E]

    node_features = jnp.eye(total_nodes, dtype=jnp.float32)           # [N, N]
    a_hat = build_gcn_norm_adj(edge_index, total_nodes)               # [N, N]

    params = init_params(k_p, input_dim, hidden_dim, output_dim)

    out = gcn_recommendation_forward(node_features, a_hat, params)
    out = jax.block_until_ready(out)

    ref = reference_forward(node_features, a_hat, params)
    np.testing.assert_allclose(np.asarray(out), np.asarray(ref), rtol=1e-2, atol=1e-2)

    assert out.shape == (total_nodes, output_dim)
    print("KERNEL_OK")
</pallas_src>

<mosaic_0001>
module attributes {stable_mosaic.version = 11 : i64} {
  func.func @fused_gcn_kernel(%arg0: memref<256x256xbf16, #tpu.memory_space<vmem>>, %arg1: memref<256x256xbf16, #tpu.memory_space<vmem>>, %arg2: memref<256x128xbf16, #tpu.memory_space<vmem>>, %arg3: memref<1x128xf32, #tpu.memory_space<vmem>>, %arg4: memref<128x128xbf16, #tpu.memory_space<vmem>>, %arg5: memref<1x128xf32, #tpu.memory_space<vmem>>, %arg6: memref<128x128xbf16, #tpu.memory_space<vmem>>, %arg7: memref<1x128xf32, #tpu.memory_space<vmem>>, %arg8: memref<1x128xf32, #tpu.memory_space<vmem>>, %arg9: memref<1x1xf32, #tpu.memory_space<vmem>>, %arg10: memref<256x1xf32, #tpu.memory_space<vmem>>) attributes {dimension_semantics = [], scalar_prefetch = 0 : i64, scratch_operands = 0 : i64, tpu.core_type = #tpu.core_type<tc>} {
    %c0 = arith.constant 0 : index
    %c0_0 = arith.constant 0 : index
    %0 = vector.load %arg0[%c0, %c0_0] : memref<256x256xbf16, #tpu.memory_space<vmem>>, vector<256x256xbf16>
    %c0_1 = arith.constant 0 : index
    %c0_2 = arith.constant 0 : index
    %1 = vector.load %arg1[%c0_1, %c0_2] : memref<256x256xbf16, #tpu.memory_space<vmem>>, vector<256x256xbf16>
    %c0_3 = arith.constant 0 : index
    %c0_4 = arith.constant 0 : index
    %2 = vector.load %arg2[%c0_3, %c0_4] : memref<256x128xbf16, #tpu.memory_space<vmem>>, vector<256x128xbf16>
    %cst = arith.constant dense<0.000000e+00> : vector<256x128xf32>
    %3 = tpu.matmul %1, %2, %cst {dimension_numbers = #tpu.dot_dimension_numbers<[1], [0], [0], [1], [0, 0, 1, 1], [], []>} : vector<256x256xbf16>, vector<256x128xbf16>, vector<256x128xf32> -> vector<256x128xf32>
    %4 = arith.truncf %3 : vector<256x128xf32> to vector<256x128xbf16>
    %cst_5 = arith.constant dense<0.000000e+00> : vector<256x128xf32>
    %5 = tpu.matmul %0, %4, %cst_5 {dimension_numbers = #tpu.dot_dimension_numbers<[1], [0], [0], [1], [0, 0, 1, 1], [], []>} : vector<256x256xbf16>, vector<256x128xbf16>, vector<256x128xf32> -> vector<256x128xf32>
    %c0_6 = arith.constant 0 : index
    %c0_7 = arith.constant 0 : index
    %6 = vector.load %arg3[%c0_6, %c0_7] : memref<1x128xf32, #tpu.memory_space<vmem>>, vector<1x128xf32>
    %7 = vector.broadcast %6 : vector<1x128xf32> to vector<256x128xf32>
    %8 = arith.addf %5, %7 : vector<256x128xf32>
    %cst_8 = arith.constant 0.000000e+00 : f32
    %9 = vector.broadcast %cst_8 : f32 to vector<256x128xf32>
    %10 = arith.maximumf %8, %9 : vector<256x128xf32>
    %11 = arith.truncf %10 : vector<256x128xf32> to vector<256x128xbf16>
    %c0_9 = arith.constant 0 : index
    %c0_10 = arith.constant 0 : index
    %12 = vector.load %arg4[%c0_9, %c0_10] : memref<128x128xbf16, #tpu.memory_space<vmem>>, vector<128x128xbf16>
    %cst_11 = arith.constant dense<0.000000e+00> : vector<256x128xf32>
    %13 = tpu.matmul %11, %12, %cst_11 {dimension_numbers = #tpu.dot_dimension_numbers<[1], [0], [0], [1], [0, 0, 1, 1], [], []>} : vector<256x128xbf16>, vector<128x128xbf16>, vector<256x128xf32> -> vector<256x128xf32>
    %14 = arith.truncf %13 : vector<256x128xf32> to vector<256x128xbf16>
    %cst_12 = arith.constant dense<0.000000e+00> : vector<256x128xf32>
    %15 = tpu.matmul %0, %14, %cst_12 {dimension_numbers = #tpu.dot_dimension_numbers<[1], [0], [0], [1], [0, 0, 1, 1], [], []>} : vector<256x256xbf16>, vector<256x128xbf16>, vector<256x128xf32> -> vector<256x128xf32>
    %c0_13 = arith.constant 0 : index
    %c0_14 = arith.constant 0 : index
    %16 = vector.load %arg5[%c0_13, %c0_14] : memref<1x128xf32, #tpu.memory_space<vmem>>, vector<1x128xf32>
    %17 = vector.broadcast %16 : vector<1x128xf32> to vector<256x128xf32>
    %18 = arith.addf %15, %17 : vector<256x128xf32>
    %cst_15 = arith.constant 0.000000e+00 : f32
    %19 = vector.broadcast %cst_15 : f32 to vector<256x128xf32>
    %20 = arith.maximumf %18, %19 : vector<256x128xf32>
    %21 = arith.truncf %20 : vector<256x128xf32> to vector<256x128xbf16>
    %c0_16 = arith.constant 0 : index
    %c0_17 = arith.constant 0 : index
    %22 = vector.load %arg6[%c0_16, %c0_17] : memref<128x128xbf16, #tpu.memory_space<vmem>>, vector<128x128xbf16>
    %cst_18 = arith.constant dense<0.000000e+00> : vector<256x128xf32>
    %23 = tpu.matmul %21, %22, %cst_18 {dimension_numbers = #tpu.dot_dimension_numbers<[1], [0], [0], [1], [0, 0, 1, 1], [], []>} : vector<256x128xbf16>, vector<128x128xbf16>, vector<256x128xf32> -> vector<256x128xf32>
    %24 = arith.truncf %23 : vector<256x128xf32> to vector<256x128xbf16>
    %cst_19 = arith.constant dense<0.000000e+00> : vector<256x128xf32>
    %25 = tpu.matmul %0, %24, %cst_19 {dimension_numbers = #tpu.dot_dimension_numbers<[1], [0], [0], [1], [0, 0, 1, 1], [], []>} : vector<256x256xbf16>, vector<256x128xbf16>, vector<256x128xf32> -> vector<256x128xf32>
    %c0_20 = arith.constant 0 : index
    %c0_21 = arith.constant 0 : index
    %26 = vector.load %arg7[%c0_20, %c0_21] : memref<1x128xf32, #tpu.memory_space<vmem>>, vector<1x128xf32>
    %27 = vector.broadcast %26 : vector<1x128xf32> to vector<256x128xf32>
    %28 = arith.addf %25, %27 : vector<256x128xf32>
    %cst_22 = arith.constant 0.000000e+00 : f32
    %29 = vector.broadcast %cst_22 : f32 to vector<256x128xf32>
    %30 = arith.maximumf %28, %29 : vector<256x128xf32>
    %31 = arith.truncf %30 : vector<256x128xf32> to vector<256x128xbf16>
    %32 = arith.extf %31 : vector<256x128xbf16> to vector<256x128xf32>
    %c0_23 = arith.constant 0 : index
    %c0_24 = arith.constant 0 : index
    %33 = vector.load %arg8[%c0_23, %c0_24] : memref<1x128xf32, #tpu.memory_space<vmem>>, vector<1x128xf32>
    %34 = vector.broadcast %33 : vector<1x128xf32> to vector<256x128xf32>
    %35 = arith.mulf %32, %34 : vector<256x128xf32>
    %cst_25 = arith.constant dense<0.000000e+00> : vector<256xf32>
    %36 = vector.multi_reduction <add>, %35, %cst_25 [1] : vector<256x128xf32> to vector<256xf32>
    %37 = vector.shape_cast %36 : vector<256xf32> to vector<256x1xf32>
    %c0_26 = arith.constant 0 : index
    %c0_27 = arith.constant 0 : index
    %38 = vector.load %arg9[%c0_26, %c0_27] : memref<1x1xf32, #tpu.memory_space<vmem>>, vector<1x1xf32>
    %39 = vector.broadcast %38 : vector<1x1xf32> to vector<256x1xf32>
    %40 = arith.addf %37, %39 : vector<256x1xf32>
    %c0_28 = arith.constant 0 : index
    %c0_29 = arith.constant 0 : index
    %41 = vector.load %arg10[%c0_28, %c0_29] : memref<256x1xf32, #tpu.memory_space<vmem>>, vector<256x1xf32>
    tpu.vector_store %arg10[%c0_28, %c0_29], %40 {strides = array<i32>} : memref<256x1xf32, #tpu.memory_space<vmem>>, vector<256x1xf32>,
    return
  }
}

</mosaic_0001>

<bundles_post_ra>
// kernel: tpu_custom_call.1
= control target key start
LH: loop header
LB: loop body
LE: loop exit
PB: predicated region body
PF: predicated region fallthrough
CT: control target
= control target key end

     0   :  { %s3393_s0 = inlined_call_operand.hbm [shape: bf16[256,256], index: 0, kind: input, shape index: {}]   ;;  %s3394_s1 = inlined_call_operand.hbm [shape: bf16[256,256], index: 1, kind: input, shape index: {}]   ;;  %s3395_s2 = inlined_call_operand.hbm [shape: bf16[256,128], index: 2, kind: input, shape index: {}]   ;;  %s3396_s3 = inlined_call_operand.vmem [shape: f32[1,128], index: 3, kind: input, shape index: {}]   ;;  %s3397_s4 = inlined_call_operand.hbm [shape: bf16[128,128], index: 4, kind: input, shape index: {}]   ;;  %s3398_s5 = inlined_call_operand.vmem [shape: f32[1,128], index: 5, kind: input, shape index: {}]   ;;  %s3399_s6 = inlined_call_operand.hbm [shape: bf16[128,128], index: 6, kind: input, shape index: {}]   ;;  %s3400_s7 = inlined_call_operand.vmem [shape: f32[1,128], index: 7, kind: input, shape index: {}]   ;;  %s3401_s8 = inlined_call_operand.vmem [shape: f32[1,128], index: 8, kind: input, shape index: {}]   ;;  %s3402_s9 = inlined_call_operand.<no memory space> [shape: f32[1,1], index: 9, kind: input, shape index: {}]   ;;  %s3403_s10 = inlined_call_operand.vmem [shape: f32[256,1], index: 10, kind: output, shape index: {}]  }
   0x1   :  { %v15_v0 = vstv %s3402_s9 }
   0x2   :  { %16 = vst [vmem:[#allocation2] sm:$0x1] %v15_v0 }
   0x3   :  { %17 = vsyncpa [#allocation4], 0 }
   0x4   :  { %18 = vsyncpa [#allocation6], 0 }
   0x5   :  { %19 = vsyncpa [#allocation9], 0  ;;  %s37_s17 = sshll.u32 %s3394_s1, 4  ;;  %s2709_s18 = smov [#allocation5]   ;;  %s38_s17 = int_to_ptr.hbm [resolvable:$true] %s37_s17 }
   0x6   :  { %s39_s19 = sshll.u32 %s2709_s18, 4  ;;  %s2710_s20 = smov 128   ;;  %s40_s19 = int_to_ptr.vmem [resolvable:$true] %s39_s19 }
   0x7   :  { %s2711_s21 = smov 8   ;;  %s65_s24 = sshll.u32 %s3397_s4, 4  ;;  %s66_s24 = int_to_ptr.hbm [resolvable:$true] %s65_s24 }
   0x8   :  { %45 = dma.hbm_to_vmem [thread:$0]  %s38_s17, 4096, %s40_s19, [#allocation6], %s2710_s20, %s2710_s20, %s2711_s21  }
   0x9   :  { %s2712_s9 = smov [#allocation8]   ;;  %s24_s28 = sshll.u32 %s3393_s0, 4  ;;  %s25_s28 = int_to_ptr.hbm [resolvable:$true] %s24_s28 }
   0xa   :  { %s67_s25 = sshll.u32 %s2712_s9, 4  ;;  %s2713_s1 = smov 64   ;;  %s68_s25 = int_to_ptr.vmem [resolvable:$true] %s67_s25 }
   0xb   :  { %s2714_s29 = smov 4   ;;  %s50_s12 = sshll.u32 %s3395_s2, 4  ;;  %s51_s12 = int_to_ptr.hbm [resolvable:$true] %s50_s12 }
   0xc   :  { %73 = dma.hbm_to_vmem [thread:$0]  %s66_s24, 1024, %s68_s25, [#allocation9], %s2713_s1, %s2713_s1, %s2714_s29  }
   0xd   :  { %s2715_s13 = smov [#allocation3]   ;;  %s2716_s4 = smov [#allocation7]  }
   0xe   :  { %s26_s14 = sshll.u32 %s2715_s13, 4  ;;  %s52_s15 = sshll.u32 %s2716_s4, 4  ;;  %s27_s14 = int_to_ptr.vmem [resolvable:$true] %s26_s14  ;;  %s53_s15 = int_to_ptr.vmem [resolvable:$true] %s52_s15 }
   0xf   :  { %32 = dma.hbm_to_vmem [thread:$0]  %s25_s28, 4096, %s27_s14, [#allocation4], %s2710_s20, %s2710_s20, %s2711_s21  }
  0x10   :  { %s80_s0 = sshll.u32 %s3399_s6, 4  ;;  %s2717_s18 = smov [#allocation10]   ;;  %s81_s0 = int_to_ptr.hbm [resolvable:$true] %s80_s0 }
  0x11   :  { %58 = dma.hbm_to_vmem [thread:$0]  %s51_s12, 2048, %s53_s15, [#allocation6], %s2713_s1, %s2713_s1, %s2714_s29  }
  0x12   :  { %s82_s19 = sshll.u32 %s2717_s18, 4  ;;  %s83_s19 = int_to_ptr.vmem [resolvable:$true] %s82_s19 }
  0x13   :  { %88 = dma.hbm_to_vmem [thread:$0]  %s81_s0, 1024, %s83_s19, [#allocation9], %s2713_s1, %s2713_s1, %s2714_s29  }
  0x14   :  { %2703 = dma.done.wait [#allocation4], 4096  }
  0x15   :  { %2704 = vsyncadd [#allocation4], 4294963200 }
  0x16   :  { %2705 = dma.done.wait [#allocation6], 6144  }
  0x17   :  { %2706 = vsyncadd [#allocation6], 4294961152 }
  0x18   :  { %2707 = dma.done.wait [#allocation9], 2048  }
  0x19   :  { %2708 = vsyncadd [#allocation9], 4294965248  ;;  %v2528_v1 = vld [vmem:[#allocation7 + $0x38] sm:$0xff]  ;;  %v2527_v3 = vld [vmem:[#allocation7 + $0x30] sm:$0xff]  ;;  %vm2033_vm0 = vcmask 7168  }
  0x1a   :  { %v2536_v2 = vld [vmem:[#allocation7 + $0x78] sm:$0xff]  ;;  %467 = vmatpush.bf16.msra.mxu0 %v2528_v1  ;;  %2553 = vmatpush.bf16.msra.mxu2 %v2528_v1  ;;  %v2535_v4 = vld [vmem:[#allocation7 + $0x70] sm:$0xff]  ;;  %v2526_v5 = vld [vmem:[#allocation7 + $0x28] sm:$0xff] }
  0x1b   :  { %556 = vmatpush.bf16.msra.mxu1 %v2536_v2  ;;  %2561 = vmatpush.bf16.msra.mxu3 %v2536_v2  ;;  %v2534_v6 = vld [vmem:[#allocation7 + $0x68] sm:$0xff]  ;;  %v2525_v7 = vld [vmem:[#allocation7 + $0x20] sm:$0xff]  ;;  %v2524_v9 = vld [vmem:[#allocation7 + $0x18] sm:$0xff] }
  0x1c   :  { %v2533_v8 = vld [vmem:[#allocation7 + $0x60] sm:$0xff]  ;;  %v2532_v10 = vld [vmem:[#allocation7 + $0x58] sm:$0xff]  ;;  %v2523_v11 = vld [vmem:[#allocation7 + $0x10] sm:$0xff] }
  0x1d   :  { %v2531_v12 = vld [vmem:[#allocation7 + $0x50] sm:$0xff]  ;;  %v2522_v13 = vld [vmem:[#allocation7 + $0x8] sm:$0xff]  ;;  %v2521_v15 = vld [vmem:[#allocation7] sm:$0xff] }
  0x1e   :  { %468 = vmatpush.bf16.msra.mxu0 %v2527_v3  ;;  %2554 = vmatpush.bf16.msra.mxu2 %v2527_v3  ;;  %v2530_v14 = vld [vmem:[#allocation7 + $0x48] sm:$0xff]  ;;  %v2529_v16 = vld [vmem:[#allocation7 + $0x40] sm:$0xff]  ;;  %v2083_v29 = vld [vmem:[#allocation5 + $0x10] sm:$0xf] }
  0x1f   :  { %557 = vmatpush.bf16.msra.mxu1 %v2535_v4  ;;  %2562 = vmatpush.bf16.msra.mxu3 %v2535_v4  ;;  %v2075_v17 = vld [vmem:[#allocation5] sm:$0xf]  ;;  %v2490_v18 = vld [vmem:[#allocation5 + $0x4] sm:$0xf0]  ;;  %v2489_v21 = vld [vmem:[#allocation5 + $0x4] sm:$0xf] }
  0x20   :  { %v2139_v19 = vld [vmem:[#allocation5 + $0x80] sm:$0xf]  ;;  %v2506_v20 = vld [vmem:[#allocation5 + $0x84] sm:$0xf0]  ;;  %v2077_v22 = vld [vmem:[#allocation5 + $0x8] sm:$0xf0]  ;;  %v2076_v25 = vor.u32 %v2490_v18, %v2075_v17 }
  0x21   :  { %v2505_v23 = vld [vmem:[#allocation5 + $0x84] sm:$0xf]  ;;  %v2141_v24 = vld [vmem:[#allocation5 + $0x88] sm:$0xf0]  ;;  %v2140_v26 = vor.u32 %v2506_v20, %v2139_v19  ;;  %v2080_v27 = vor.u32 %v2489_v21, %v2077_v22  ;;  %v2492_v30 = vld [vmem:[#allocation5 + $0x14] sm:$0xf0] }
  0x22   :  { %469 = vmatpush.bf16.msra.mxu0 %v2526_v5  ;;  %2555 = vmatpush.bf16.msra.mxu2 %v2526_v5  ;;  %v2144_v28 = vor.u32 %v2505_v23, %v2141_v24  ;;  %v2147_v31 = vld [vmem:[#allocation5 + $0x90] sm:$0xf]  ;;  %v2508_v32 = vld [vmem:[#allocation5 + $0x94] sm:$0xf0]  ;;  %v2491_v33 = vld [vmem:[#allocation5 + $0x14] sm:$0xf]  ;;  %v2084_v37 = vor.u32 %v2492_v30, %v2083_v29 }
  0x23   :  { %558 = vmatpush.bf16.msra.mxu1 %v2534_v6  ;;  %2563 = vmatpush.bf16.msra.mxu3 %v2534_v6  ;;  %v2085_v34 = vld [vmem:[#allocation5 + $0x18] sm:$0xf0]  ;;  %v2507_v35 = vld [vmem:[#allocation5 + $0x94] sm:$0xf]  ;;  %v2148_v38 = vor.u32 %v2508_v32, %v2147_v31  ;;  %v2091_v41 = vld [vmem:[#allocation5 + $0x20] sm:$0xf] }
  0x24   :  { %v2149_v36 = vld [vmem:[#allocation5 + $0x98] sm:$0xf0]  ;;  %v2088_v39 = vor.u32 %v2491_v33, %v2085_v34  ;;  %v2494_v42 = vld [vmem:[#allocation5 + $0x24] sm:$0xf0]  ;;  %v2155_v43 = vld [vmem:[#allocation5 + $0xa0] sm:$0xf] }
  0x25   :  { %v2152_v40 = vor.u32 %v2507_v35, %v2149_v36  ;;  %v2510_v44 = vld [vmem:[#allocation5 + $0xa4] sm:$0xf0]  ;;  %v2493_v45 = vld [vmem:[#allocation5 + $0x24] sm:$0xf]  ;;  %v2093_v46 = vld [vmem:[#allocation5 + $0x28] sm:$0xf0]  ;;  %v2092_v49 = vor.u32 %v2494_v42, %v2091_v41 }
  0x26   :  { %470 = vmatpush.bf16.msra.mxu0 %v2525_v7  ;;  %2556 = vmatpush.bf16.msra.mxu2 %v2525_v7  ;;  %v2509_v47 = vld [vmem:[#allocation5 + $0xa4] sm:$0xf]  ;;  %v2157_v48 = vld [vmem:[#allocation5 + $0xa8] sm:$0xf0]  ;;  %v2156_v50 = vor.u32 %v2510_v44, %v2155_v43  ;;  %v2096_v51 = vor.u32 %v2493_v45, %v2093_v46  ;;  %v2099_v53 = vld [vmem:[#allocation5 + $0x30] sm:$0xf] }
  0x27   :  { %559 = vmatpush.bf16.msra.mxu1 %v2533_v8  ;;  %2564 = vmatpush.bf16.msra.mxu3 %v2533_v8  ;;  %v2160_v52 = vor.u32 %v2509_v47, %v2157_v48  ;;  %v2496_v54 = vld [vmem:[#allocation5 + $0x34] sm:$0xf0]  ;;  %v2163_v55 = vld [vmem:[#allocation5 + $0xb0] sm:$0xf]  ;;  %v2495_v57 = vld [vmem:[#allocation5 + $0x34] sm:$0xf] }
  0x28   :  { %v2512_v56 = vld [vmem:[#allocation5 + $0xb4] sm:$0xf0]  ;;  %v2101_v58 = vld [vmem:[#allocation5 + $0x38] sm:$0xf0]  ;;  %v2511_v59 = vld [vmem:[#allocation5 + $0xb4] sm:$0xf]  ;;  %v2100_v61 = vor.u32 %v2496_v54, %v2099_v53 }
  0x29   :  { %v2165_v60 = vld [vmem:[#allocation5 + $0xb8] sm:$0xf0]  ;;  %v2164_v62 = vor.u32 %v2512_v56, %v2163_v55  ;;  %v2104_v63 = vor.u32 %v2495_v57, %v2101_v58  ;;  %v2107_v1 = vld [vmem:[#allocation5 + $0x40] sm:$0xf]  ;;  %v2498_v2 = vld [vmem:[#allocation5 + $0x44] sm:$0xf0] }
  0x2a   :  { %471 = vmatpush.bf16.msra.mxu0 %v2524_v9  ;;  %2557 = vmatpush.bf16.msra.mxu2 %v2524_v9  ;;  %v2168_v0 = vor.u32 %v2511_v59, %v2165_v60  ;;  %v2171_v3 = vld [vmem:[#allocation5 + $0xc0] sm:$0xf]  ;;  %v2514_v4 = vld [vmem:[#allocation5 + $0xc4] sm:$0xf0]  ;;  %v2497_v5 = vld [vmem:[#allocation5 + $0x44] sm:$0xf]  ;;  %v2108_v9 = vor.u32 %v2498_v2, %v2107_v1 }
  0x2b   :  { %560 = vmatpush.bf16.msra.mxu1 %v2532_v10  ;;  %2565 = vmatpush.bf16.msra.mxu3 %v2532_v10  ;;  %v2109_v6 = vld [vmem:[#allocation5 + $0x48] sm:$0xf0]  ;;  %v2513_v7 = vld [vmem:[#allocation5 + $0xc4] sm:$0xf]  ;;  %v2172_v10 = vor.u32 %v2514_v4, %v2171_v3  ;;  %v2499_v17 = vld [vmem:[#allocation5 + $0x54] sm:$0xf] }
  0x2c   :  { %v2173_v8 = vld [vmem:[#allocation5 + $0xc8] sm:$0xf0]  ;;  %v2117_v18 = vld [vmem:[#allocation5 + $0x58] sm:$0xf0]  ;;  %v2515_v19 = vld [vmem:[#allocation5 + $0xd4] sm:$0xf] }
  0x2d   :  { %v2181_v20 = vld [vmem:[#allocation5 + $0xd8] sm:$0xf0]  ;;  %v2120_v23 = vor.u32 %v2499_v17, %v2117_v18  ;;  %v2501_v29 = vld [vmem:[#allocation5 + $0x64] sm:$0xf]  ;;  %v2125_v30 = vld [vmem:[#allocation5 + $0x68] sm:$0xf0] }
  0x2e   :  { %472 = vmatpush.bf16.msra.mxu0 %v2523_v11  ;;  %2558 = vmatpush.bf16.msra.mxu2 %v2523_v11  ;;  %v2112_v11 = vor.u32 %v2497_v5, %v2109_v6  ;;  %v2184_v24 = vor.u32 %v2515_v19, %v2181_v20  ;;  %v2517_v31 = vld [vmem:[#allocation5 + $0xe4] sm:$0xf]  ;;  %v2189_v32 = vld [vmem:[#allocation5 + $0xe8] sm:$0xf0]  ;;  %v2128_v35 = vor.u32 %v2501_v29, %v2125_v30  ;;  %v2503_v41 = vld [vmem:[#allocation5 + $0x74] sm:$0xf] }
  0x2f   :  { %561 = vmatpush.bf16.msra.mxu1 %v2531_v12  ;;  %2566 = vmatpush.bf16.msra.mxu3 %v2531_v12  ;;  %v2176_v12 = vor.u32 %v2513_v7, %v2173_v8  ;;  %v2192_v36 = vor.u32 %v2517_v31, %v2189_v32  ;;  %v2133_v42 = vld [vmem:[#allocation5 + $0x78] sm:$0xf0]  ;;  %v2519_v43 = vld [vmem:[#allocation5 + $0xf4] sm:$0xf] }
  0x30   :  { %v2197_v44 = vld [vmem:[#allocation5 + $0xf8] sm:$0xf0]  ;;  %v2136_v47 = vor.u32 %v2503_v41, %v2133_v42 }
  0x31   :  { %v2200_v48 = vor.u32 %v2519_v43, %v2197_v44 }
  0x32   :  { %473 = vmatpush.bf16.msra.mxu0 %v2522_v13  ;;  %2559 = vmatpush.bf16.msra.mxu2 %v2522_v13  ;;  %v2115_v13 = vld [vmem:[#allocation5 + $0x50] sm:$0xf] }
  0x33   :  { %562 = vmatpush.bf16.msra.mxu1 %v2530_v14  ;;  %2567 = vmatpush.bf16.msra.mxu3 %v2530_v14  ;;  %v2500_v14 = vld [vmem:[#allocation5 + $0x54] sm:$0xf0] }
  0x34   :  { %v2116_v21 = vor.u32 %v2500_v14, %v2115_v13 }
  0x36   :  { %474 = vmatpush.bf16.msra.mxu0 %v2521_v15  ;;  %2560 = vmatpush.bf16.msra.mxu2 %v2521_v15  ;;  %v2179_v15 = vld [vmem:[#allocation5 + $0xd0] sm:$0xf] }
  0x37   :  { %563 = vmatpush.bf16.msra.mxu1 %v2529_v16  ;;  %2568 = vmatpush.bf16.msra.mxu3 %v2529_v16  ;;  %v2516_v16 = vld [vmem:[#allocation5 + $0xd4] sm:$0xf0] }
  0x38   :  { %v2180_v22 = vor.u32 %v2516_v16, %v2179_v15 }
  0x39   :  { %475 = vmatmul.bf16.vlgmr.msra.gmra.mxu0 %v2076_v25  ;;  %515 = vmatmul.bf16.vlgmr.msra.gmra.mxu2 %v2140_v26  ;;  %v2123_v25 = vld [vmem:[#allocation5 + $0x60] sm:$0xf]  ;;  %v2502_v26 = vld [vmem:[#allocation5 + $0x64] sm:$0xf0] }
  0x3a   :  { %564 = vmatmul.bf16.vlgmr.msra.gmra.mxu1 %v2080_v27  ;;  %604 = vmatmul.bf16.vlgmr.msra.gmra.mxu3 %v2144_v28  ;;  %v2187_v27 = vld [vmem:[#allocation5 + $0xe0] sm:$0xf]  ;;  %v2518_v28 = vld [vmem:[#allocation5 + $0xe4] sm:$0xf0]  ;;  %v2124_v33 = vor.u32 %v2502_v26, %v2123_v25 }
  0x3b   :  { %v2188_v34 = vor.u32 %v2518_v28, %v2187_v27 }
  0x49   :  { %480 = vmatmul.bf16.gmra.mxu0 %v2084_v37  ;;  %520 = vmatmul.bf16.gmra.mxu2 %v2148_v38  ;;  %v2131_v37 = vld [vmem:[#allocation5 + $0x70] sm:$0xf]  ;;  %v2504_v38 = vld [vmem:[#allocation5 + $0x74] sm:$0xf0] }
  0x4a   :  { %569 = vmatmul.bf16.gmra.mxu1 %v2088_v39  ;;  %609 = vmatmul.bf16.gmra.mxu3 %v2152_v40  ;;  %v2195_v39 = vld [vmem:[#allocation5 + $0xf0] sm:$0xf]  ;;  %v2520_v40 = vld [vmem:[#allocation5 + $0xf4] sm:$0xf0]  ;;  %v2132_v45 = vor.u32 %v2504_v38, %v2131_v37 }
  0x4b   :  { %v2196_v46 = vor.u32 %v2520_v40, %v2195_v39 }
  0x59   :  { %485 = vmatmul.bf16.gmra.mxu0 %v2092_v49  ;;  %525 = vmatmul.bf16.gmra.mxu2 %v2156_v50 }
  0x5a   :  { %574 = vmatmul.bf16.gmra.mxu1 %v2096_v51  ;;  %614 = vmatmul.bf16.gmra.mxu3 %v2160_v52 }
  0x69   :  { %490 = vmatmul.bf16.gmra.mxu0 %v2100_v61  ;;  %530 = vmatmul.bf16.gmra.mxu2 %v2164_v62 }
  0x6a   :  { %579 = vmatmul.bf16.gmra.mxu1 %v2104_v63  ;;  %619 = vmatmul.bf16.gmra.mxu3 %v2168_v0 }
  0x79   :  { %495 = vmatmul.bf16.gmra.mxu0 %v2108_v9  ;;  %535 = vmatmul.bf16.gmra.mxu2 %v2172_v10 }
  0x7a   :  { %584 = vmatmul.bf16.gmra.mxu1 %v2112_v11  ;;  %624 = vmatmul.bf16.gmra.mxu3 %v2176_v12 }
  0x89   :  { %500 = vmatmul.bf16.gmra.mxu0 %v2116_v21  ;;  %540 = vmatmul.bf16.gmra.mxu2 %v2180_v22 }
  0x8a   :  { %589 = vmatmul.bf16.gmra.mxu1 %v2120_v23  ;;  %629 = vmatmul.bf16.gmra.mxu3 %v2184_v24 }
  0x99   :  { %505 = vmatmul.bf16.gmra.mxu0 %v2124_v33  ;;  %545 = vmatmul.bf16.gmra.mxu2 %v2188_v34 }
  0x9a   :  { %594 = vmatmul.bf16.gmra.mxu1 %v2128_v35  ;;  %634 = vmatmul.bf16.gmra.mxu3 %v2192_v36 }
  0xa9   :  { %510 = vmatmul.bf16.gmra.mxu0 %v2132_v45  ;;  %550 = vmatmul.bf16.gmra.mxu2 %v2196_v46 }
  0xaa   :  { %599 = vmatmul.bf16.gmra.mxu1 %v2136_v47  ;;  %639 = vmatmul.bf16.gmra.mxu3 %v2200_v48 }
  0xb6   :  { %v476_v49 = vpop.f32.mrf.mxu0 }
  0xb7   :  { %v565_v50 = vpop.f32.mrf.mxu1 }
  0xb8   :  { %v2791_v51 = vadd.f32 %v565_v50, %v476_v49 }
  0xba   :  { %3404 = vst [vmem:[#allocation14_spill] sm:$0xff] %v2791_v51 }
  0xbc   :  { %v516_v52 = vpop.f32.mrf.mxu2 }
  0xbd   :  { %v605_v53 = vpop.f32.mrf.mxu3 }
  0xbe   :  { %v2793_v54 = vadd.f32 %v605_v53, %v516_v52  ;;  %v2795_v55 = vpop.f32.mrf.mxu0 }
  0xbf   :  { %v2797_v56 = vpop.f32.mrf.mxu1 }
  0xc0   :  { %3405 = vst [vmem:[#allocation15_spill] sm:$0xff] %v2793_v54 }
  0xc4   :  { %v2799_v57 = vpop.f32.mrf.mxu2 }
  0xc5   :  { %3406 = vst [vmem:[#allocation16_spill] sm:$0xff] %v2799_v57  ;;  %v2801_v58 = vpop.f32.mrf.mxu3 }
  0xc6   :  { %3407 = vst [vmem:[#allocation17_spill] sm:$0xff] %v2801_v58  ;;  %v481_v59 = vpop.f32.mrf.mxu0 }
  0xc7   :  { %v570_v60 = vpop.f32.mrf.mxu1 }
  0xc8   :  { %v2803_v61 = vadd.f32 %v570_v60, %v481_v59 }
  0xcc   :  { %v521_v62 = vpop.f32.mrf.mxu2 }
  0xcd   :  { %v610_v63 = vpop.f32.mrf.mxu3 }
  0xce   :  { %v2805_v0 = vadd.f32 %v610_v63, %v521_v62  ;;  %v2807_v1 = vpop.f32.mrf.mxu0 }
  0xcf   :  { %v2809_v2 = vpop.f32.mrf.mxu1 }
  0xd0   :  { %3408 = vst [vmem:[#allocation18_spill] sm:$0xff] %v2805_v0 }
  0xd4   :  { %v2811_v3 = vpop.f32.mrf.mxu2 }
  0xd5   :  { %v2813_v4 = vpop.f32.mrf.mxu3 }
  0xd6   :  { %v486_v5 = vpop.f32.mrf.mxu0 }
  0xd7   :  { %v575_v6 = vpop.f32.mrf.mxu1 }
  0xd8   :  { %v2815_v7 = vadd.f32 %v575_v6, %v486_v5 }
  0xdc   :  { %v526_v8 = vpop.f32.mrf.mxu2 }
  0xdd   :  { %v615_v9 = vpop.f32.mrf.mxu3 }
  0xde   :  { %v2817_v10 = vadd.f32 %v615_v9, %v526_v8  ;;  %v2819_v11 = vpop.f32.mrf.mxu0 }
  0xdf   :  { %v2821_v12 = vpop.f32.mrf.mxu1 }
  0xe4   :  { %v2823_v13 = vpop.f32.mrf.mxu2 }
  0xe5   :  { %v2825_v14 = vpop.f32.mrf.mxu3 }
  0xe6   :  { %v491_v15 = vpop.f32.mrf.mxu0 }
  0xe7   :  { %v580_v16 = vpop.f32.mrf.mxu1 }
  0xe8   :  { %v2827_v17 = vadd.f32 %v580_v16, %v491_v15 }
  0xec   :  { %v531_v18 = vpop.f32.mrf.mxu2 }
  0xed   :  { %v620_v19 = vpop.f32.mrf.mxu3 }
  0xee   :  { %v2829_v20 = vadd.f32 %v620_v19, %v531_v18  ;;  %v493_v21 = vpop.f32.mrf.mxu0 }
  0xef   :  { %v582_v22 = vpop.f32.mrf.mxu1 }
  0xf4   :  { %v2831_v23 = vpop.f32.mrf.mxu2 }
  0xf5   :  { %v2833_v24 = vpop.f32.mrf.mxu3 }
  0xf6   :  { %v496_v25 = vpop.f32.mrf.mxu0 }
  0xf7   :  { %v585_v26 = vpop.f32.mrf.mxu1 }
  0xf8   :  { %v586_v27 = vadd.f32 %v585_v26, %v496_v25 }
  0xfc   :  { %v536_v28 = vpop.f32.mrf.mxu2 }
  0xfd   :  { %v625_v29 = vpop.f32.mrf.mxu3 }
  0xfe   :  { %v2835_v30 = vadd.f32 %v625_v29, %v536_v28  ;;  %v498_v31 = vpop.f32.mrf.mxu0 }
  0xff   :  { %v587_v32 = vpop.f32.mrf.mxu1 }
 0x100   :  { %v588_v58 = vadd.f32 %v587_v32, %v498_v31  ;;  %v2460_v31 = vld [vmem:[#allocation3 + $0x14] sm:$0xf0] }
 0x104   :  { %v538_v33 = vpop.f32.mrf.mxu2 }
 0x105   :  { %v627_v34 = vpop.f32.mrf.mxu3 }
 0x106   :  { %v501_v35 = vpop.f32.mrf.mxu0 }
 0x107   :  { %v590_v36 = vpop.f32.mrf.mxu1 }
 0x108   :  { %v591_v29 = vadd.f32 %v590_v36, %v501_v35  ;;  %v578_v35 = vadd.f32 %v2821_v12, %v2819_v11  ;;  %v568_v12 = vadd.f32 %v2797_v56, %v2795_v55  ;;  %v3412_v55 = vld [vmem:[#allocation18_spill] sm:$0xff] }
 0x10c   :  { %v541_v37 = vpop.f32.mrf.mxu2 }
 0x10d   :  { %v630_v38 = vpop.f32.mrf.mxu3 }
 0x10e   :  { %v503_v39 = vpop.f32.mrf.mxu0 }
 0x10f   :  { %v592_v40 = vpop.f32.mrf.mxu1 }
 0x110   :  { %v593_v19 = vadd.f32 %v592_v40, %v503_v39  ;;  %v2462_v40 = vld [vmem:[#allocation3 + $0x24] sm:$0xf0] }
 0x112   :  { %v650_v51 = vpack.c.bf16 %v593_v19, %v591_v29  ;;  %v2468_v19 = vld [vmem:[#allocation3 + $0x54] sm:$0xf0] }
 0x114   :  { %v543_v41 = vpop.f32.mrf.mxu2 }
 0x115   :  { %v632_v42 = vpop.f32.mrf.mxu3 }
 0x116   :  { %v506_v43 = vpop.f32.mrf.mxu0 }
 0x117   :  { %v595_v44 = vpop.f32.mrf.mxu1 }
 0x118   :  { %v596_v15 = vadd.f32 %v595_v44, %v506_v43  ;;  %v631_v43 = vadd.f32 %v630_v38, %v541_v37  ;;  %v649_v44 = vpack.c.bf16 %v588_v58, %v586_v27  ;;  %v618_v58 = vadd.f32 %v2825_v14, %v2823_v13  ;;  %v2269_v27 = vld [vmem:[#allocation3 + $0x8] sm:$0xf0]  ;;  %v2283_v38 = vld [vmem:[#allocation3 + $0x20] sm:$0xf] }
 0x11c   :  { %v546_v45 = vpop.f32.mrf.mxu2 }
 0x11d   :  { %v635_v46 = vpop.f32.mrf.mxu3 }
 0x11e   :  { %v508_v47 = vpop.f32.mrf.mxu0  ;;  %v636_v57 = vadd.f32 %v635_v46, %v546_v45  ;;  %v2285_v45 = vld [vmem:[#allocation3 + $0x28] sm:$0xf0] }
 0x11f   :  { %v597_v48 = vpop.f32.mrf.mxu1 }
 0x120   :  { %v598_v8 = vadd.f32 %v597_v48, %v508_v47  ;;  %v583_v48 = vadd.f32 %v582_v22, %v493_v21  ;;  %v613_v21 = vadd.f32 %v2813_v4, %v2811_v3  ;;  %v3409_v22 = vld [vmem:[#allocation14_spill] sm:$0xff]  ;;  %v3413_v3 = vld [vmem:[#allocation15_spill] sm:$0xff] }
 0x121   :  { %v645_v13 = vpack.c.bf16 %v568_v12, %v3409_v22  ;;  %v2471_v12 = vld [vmem:[#allocation3 + $0x74] sm:$0xf]  ;;  %v2474_v22 = vld [vmem:[#allocation3 + $0x84] sm:$0xf0] }
 0x122   :  { %v651_v28 = vpack.c.bf16 %v598_v8, %v596_v15  ;;  %v648_v36 = vpack.c.bf16 %v583_v48, %v2827_v17  ;;  %v654_v56 = vpack.c.bf16 %v613_v21, %v3412_v55  ;;  %v2301_v15 = vld [vmem:[#allocation3 + $0x48] sm:$0xf0]  ;;  %v2315_v48 = vld [vmem:[#allocation3 + $0x60] sm:$0xf] }
 0x123   :  { %v2538_v21 = vld [vmem:[#allocation8 + $0x8] sm:$0xff] }
 0x124   :  { %v548_v49 = vpop.f32.mrf.mxu2 }
 0x125   :  { %v637_v50 = vpop.f32.mrf.mxu3 }
 0x126   :  { %v511_v52 = vpop.f32.mrf.mxu0  ;;  %v638_v54 = vadd.f32 %v637_v50, %v548_v49  ;;  %v2291_v49 = vld [vmem:[#allocation3 + $0x30] sm:$0xf]  ;;  %v2464_v50 = vld [vmem:[#allocation3 + $0x34] sm:$0xf0] }
 0x127   :  { %v600_v53 = vpop.f32.mrf.mxu1 }
 0x128   :  { %v601_v5 = vadd.f32 %v600_v53, %v511_v52  ;;  %v633_v52 = vadd.f32 %v632_v42, %v543_v41  ;;  %v659_v47 = vpack.c.bf16 %v638_v54, %v636_v57  ;;  %v628_v53 = vadd.f32 %v627_v34, %v538_v33  ;;  %v2459_v33 = vld [vmem:[#allocation3 + $0x14] sm:$0xf]  ;;  %v2277_v34 = vld [vmem:[#allocation3 + $0x18] sm:$0xf0]  ;;  %v2461_v42 = vld [vmem:[#allocation3 + $0x24] sm:$0xf] }
 0x129   :  { %v573_v54 = vadd.f32 %v2809_v2, %v2807_v1  ;;  %v647_v57 = vpack.c.bf16 %v578_v35, %v2815_v7  ;;  %v655_v1 = vpack.c.bf16 %v618_v58, %v2817_v10  ;;  %v2267_v2 = vld [vmem:[#allocation3] sm:$0xf]  ;;  %v2458_v7 = vld [vmem:[#allocation3 + $0x4] sm:$0xf0]  ;;  %v2869_v37 = vor.u32 %v2459_v33, %v2277_v34  ;;  %v2539_v58 = vld [vmem:[#allocation8 + $0x10] sm:$0xff] }
 0x12a   :  { %v658_v39 = vpack.c.bf16 %v633_v52, %v631_v43  ;;  %v2856_v14 = vor.u32 %v2458_v7, %v2267_v2  ;;  %v2872_v41 = vor.u32 %v2462_v40, %v2283_v38  ;;  %v2875_v46 = vor.u32 %v2461_v42, %v2285_v45  ;;  %v2544_v52 = vld [vmem:[#allocation8 + $0x38] sm:$0xff]  ;;  %v2470_v43 = vld [vmem:[#allocation3 + $0x64] sm:$0xf0]  ;;  %v2537_v2 = vld [vmem:[#allocation8] sm:$0xff] }
 0x12b   :  { %v646_v17 = vpack.c.bf16 %v573_v54, %v2803_v61  ;;  %v2457_v61 = vld [vmem:[#allocation3 + $0x4] sm:$0xf]  ;;  %1115 = vmatpush.bf16.msrb.mxu0 %v2544_v52  ;;  %v2542_v35 = vld [vmem:[#allocation8 + $0x28] sm:$0xff]  ;;  %v2323_v54 = vld [vmem:[#allocation3 + $0x70] sm:$0xf] }
 0x12c   :  { %v551_v59 = vpop.f32.mrf.mxu2  ;;  %v2863_v10 = vor.u32 %v2457_v61, %v2269_v27  ;;  %v2331_v7 = vld [vmem:[#allocation3 + $0x80] sm:$0xf]  ;;  %v2339_v27 = vld [vmem:[#allocation3 + $0x90] sm:$0xf]  ;;  %v2475_v33 = vld [vmem:[#allocation3 + $0x94] sm:$0xf] }
 0x12d   :  { %v640_v60 = vpop.f32.mrf.mxu3  ;;  %v2341_v34 = vld [vmem:[#allocation3 + $0x98] sm:$0xf0]  ;;  %v2349_v52 = vld [vmem:[#allocation3 + $0xa8] sm:$0xf0] }
 0x12e   :  { %v513_v62 = vpop.f32.mrf.mxu0  ;;  %v641_v25 = vadd.f32 %v640_v60, %v551_v59  ;;  %v2878_v59 = vor.u32 %v2464_v50, %v2291_v49  ;;  %v2463_v60 = vld [vmem:[#allocation3 + $0x34] sm:$0xf]  ;;  %v2924_v49 = vor.u32 %v2475_v33, %v2341_v34 }
 0x12f   :  { %v602_v63 = vpop.f32.mrf.mxu1 }
 0x130   :  { %v603_v6 = vadd.f32 %v602_v63, %v513_v62  ;;  %v2293_v62 = vld [vmem:[#allocation3 + $0x38] sm:$0xf0] }
 0x131   :  { %v2881_v63 = vor.u32 %v2463_v60, %v2293_v62 }
 0x132   :  { %v652_v9 = vpack.c.bf16 %v603_v6, %v601_v5  ;;  %v2299_v5 = vld [vmem:[#allocation3 + $0x40] sm:$0xf]  ;;  %v2466_v6 = vld [vmem:[#allocation3 + $0x44] sm:$0xf0] }
 0x133   :  { %v2884_v8 = vor.u32 %v2466_v6, %v2299_v5 }
 0x134   :  { %825 = vmatpush.bf16.msrb.mxu2 %v652_v9  ;;  %v553_v16 = vpop.f32.mrf.mxu2  ;;  %v2465_v9 = vld [vmem:[#allocation3 + $0x44] sm:$0xf] }
 0x135   :  { %v642_v18 = vpop.f32.mrf.mxu3 }
 0x136   :  { %v643_v26 = vadd.f32 %v642_v18, %v553_v16  ;;  %v2887_v16 = vor.u32 %v2465_v9, %v2301_v15  ;;  %v2307_v18 = vld [vmem:[#allocation3 + $0x50] sm:$0xf]  ;;  %v2347_v9 = vld [vmem:[#allocation3 + $0xa0] sm:$0xf]  ;;  %v2478_v15 = vld [vmem:[#allocation3 + $0xa4] sm:$0xf0] }
 0x138   :  { %826 = vmatpush.bf16.msrb.mxu2 %v651_v28  ;;  %v660_v0 = vpack.c.bf16 %v643_v26, %v641_v25  ;;  %v2890_v25 = vor.u32 %v2468_v19, %v2307_v18  ;;  %v2467_v26 = vld [vmem:[#allocation3 + $0x54] sm:$0xf]  ;;  %v2309_v28 = vld [vmem:[#allocation3 + $0x58] sm:$0xf0] }
 0x139   :  { %v2893_v29 = vor.u32 %v2467_v26, %v2309_v28  ;;  %v2928_v26 = vor.u32 %v2478_v15, %v2347_v9  ;;  %v2477_v28 = vld [vmem:[#allocation3 + $0xa4] sm:$0xf] }
 0x13a   :  { %914 = vmatpush.bf16.msrb.mxu3 %v660_v0  ;;  %v623_v0 = vadd.f32 %v2833_v24, %v2831_v23  ;;  %v3411_v23 = vld [vmem:[#allocation17_spill] sm:$0xff] }
 0x13c   :  { %827 = vmatpush.bf16.msrb.mxu2 %v650_v51  ;;  %v657_v51 = vpack.c.bf16 %v628_v53, %v2835_v30  ;;  %v656_v11 = vpack.c.bf16 %v623_v0, %v2829_v20  ;;  %v3410_v20 = vld [vmem:[#allocation16_spill] sm:$0xff]  ;;  %v2469_v53 = vld [vmem:[#allocation3 + $0x64] sm:$0xf] }
 0x13d   :  { %v608_v24 = vadd.f32 %v3411_v23, %v3410_v20  ;;  %v2275_v30 = vld [vmem:[#allocation3 + $0x10] sm:$0xf]  ;;  %v2541_v0 = vld [vmem:[#allocation8 + $0x20] sm:$0xff]  ;;  %v2333_v23 = vld [vmem:[#allocation3 + $0x88] sm:$0xf0] }
 0x13e   :  { %915 = vmatpush.bf16.msrb.mxu3 %v659_v47  ;;  %v2866_v32 = vor.u32 %v2460_v31, %v2275_v30  ;;  %v2543_v47 = vld [vmem:[#allocation8 + $0x30] sm:$0xff]  ;;  %v2473_v20 = vld [vmem:[#allocation3 + $0x84] sm:$0xf] }
 0x13f   :  { %v653_v4 = vpack.c.bf16 %v608_v24, %v3413_v3  ;;  %1116 = vmatpush.bf16.msrb.mxu0 %v2543_v47  ;;  %v2911_v24 = vor.u32 %v2473_v20, %v2333_v23  ;;  %v2476_v3 = vld [vmem:[#allocation3 + $0x94] sm:$0xf0] }
 0x140   :  { %828 = vmatpush.bf16.msrb.mxu2 %v649_v44  ;;  %v2896_v44 = vor.u32 %v2470_v43, %v2315_v48  ;;  %v2920_v31 = vor.u32 %v2476_v3, %v2339_v27 }
 0x142   :  { %916 = vmatpush.bf16.msrb.mxu3 %v658_v39  ;;  %v2317_v39 = vld [vmem:[#allocation3 + $0x68] sm:$0xf0] }
 0x143   :  { %1117 = vmatpush.bf16.msrb.mxu0 %v2542_v35 }
 0x144   :  { %829 = vmatpush.bf16.msrb.mxu2 %v648_v36  ;;  %v2899_v36 = vor.u32 %v2469_v53, %v2317_v39  ;;  %v2932_v39 = vor.u32 %v2477_v28, %v2349_v52 }
 0x146   :  { %917 = vmatpush.bf16.msrb.mxu3 %v657_v51  ;;  %v2540_v51 = vld [vmem:[#allocation8 + $0x18] sm:$0xff] }
 0x147   :  { %1118 = vmatpush.bf16.msrb.mxu0 %v2541_v0 }
 0x148   :  { %830 = vmatpush.bf16.msrb.mxu2 %v647_v57  ;;  %v2472_v57 = vld [vmem:[#allocation3 + $0x74] sm:$0xf0] }
 0x14a   :  { %918 = vmatpush.bf16.msrb.mxu3 %v656_v11  ;;  %v2902_v11 = vor.u32 %v2472_v57, %v2323_v54 }
 0x14b   :  { %1119 = vmatpush.bf16.msrb.mxu0 %v2540_v51 }
 0x14c   :  { %831 = vmatpush.bf16.msrb.mxu2 %v646_v17  ;;  %v2325_v17 = vld [vmem:[#allocation3 + $0x78] sm:$0xf0] }
 0x14e   :  { %919 = vmatpush.bf16.msrb.mxu3 %v655_v1  ;;  %v2905_v1 = vor.u32 %v2471_v12, %v2325_v17  ;;  %v2480_v12 = vld [vmem:[#allocation3 + $0xb4] sm:$0xf0] }
 0x14f   :  { %1120 = vmatpush.bf16.msrb.mxu0 %v2539_v58  ;;  %v2355_v58 = vld [vmem:[#allocation3 + $0xb0] sm:$0xf] }
 0x150   :  { %832 = vmatpush.bf16.msrb.mxu2 %v645_v13  ;;  %v2908_v13 = vor.u32 %v2474_v22, %v2331_v7  ;;  %v2479_v7 = vld [vmem:[#allocation3 + $0xb4] sm:$0xf]  ;;  %v2357_v22 = vld [vmem:[#allocation3 + $0xb8] sm:$0xf0] }
 0x151   :  { %v2940_v27 = vor.u32 %v2479_v7, %v2357_v22 }
 0x152   :  { %920 = vmatpush.bf16.msrb.mxu3 %v654_v56  ;;  %v2917_v56 = vld [vmem:[%s3396_s3] ss:$0 sm:$0xff] }
 0x153   :  { %833 = vmatmul.bf16.vlgmr.msrb.gmra.mxu2 %v2856_v14  ;;  %1121 = vmatpush.bf16.msrb.mxu0 %v2538_v21 }
 0x156   :  { %921 = vmatpush.bf16.msrb.mxu3 %v653_v4 }
 0x157   :  { %1122 = vmatpush.bf16.msrb.mxu0 %v2537_v2  ;;  %v2936_v2 = vor.u32 %v2480_v12, %v2355_v58 }
 0x159   :  { %922 = vmatmul.bf16.vlgmr.msrb.gmra.mxu3 %v2863_v10 }
 0x163   :  { %838 = vmatmul.bf16.gmra.mxu2 %v2866_v32 }
 0x169   :  { %927 = vmatmul.bf16.gmra.mxu3 %v2869_v37 }
 0x173   :  { %843 = vmatmul.bf16.gmra.mxu2 %v2872_v41 }
 0x179   :  { %932 = vmatmul.bf16.gmra.mxu3 %v2875_v46 }
 0x183   :  { %848 = vmatmul.bf16.gmra.mxu2 %v2878_v59 }
 0x189   :  { %937 = vmatmul.bf16.gmra.mxu3 %v2881_v63 }
 0x193   :  { %853 = vmatmul.bf16.gmra.mxu2 %v2884_v8 }
 0x199   :  { %942 = vmatmul.bf16.gmra.mxu3 %v2887_v16 }
 0x1a3   :  { %858 = vmatmul.bf16.gmra.mxu2 %v2890_v25 }
 0x1a9   :  { %947 = vmatmul.bf16.gmra.mxu3 %v2893_v29 }
 0x1b3   :  { %863 = vmatmul.bf16.gmra.mxu2 %v2896_v44 }
 0x1b9   :  { %952 = vmatmul.bf16.gmra.mxu3 %v2899_v36 }
 0x1c3   :  { %868 = vmatmul.bf16.gmra.mxu2 %v2902_v11 }
 0x1c9   :  { %957 = vmatmul.bf16.gmra.mxu3 %v2905_v1 }
 0x1d3   :  { %873 = vmatmul.bf16.gmra.mxu2 %v2908_v13 }
 0x1d6   :  { %v834_v55 = vpop.f32.mrf.mxu2 }
 0x1d7   :  { %v835_v30 = vadd.f32 %v2917_v56, %v834_v55 }
 0x1d9   :  { %962 = vmatmul.bf16.gmra.mxu3 %v2911_v24 }
 0x1dc   :  { %v923_v61 = vpop.f32.mrf.mxu3 }
 0x1dd   :  { %v924_v38 = vadd.f32 %v923_v61, %v835_v30 }
 0x1de   :  { %v836_v4 = vpop.f32.mrf.mxu2 }
 0x1df   :  { %v837_v40 = vadd.f32 %v2917_v56, %v836_v4  ;;  %v1003_v60 = vmax.f32 %v924_v38, 0.0  ;;  %v2363_v38 = vld [vmem:[#allocation3 + $0xc0] sm:$0xf] }
 0x1e3   :  { %878 = vmatmul.bf16.gmra.mxu2 %v2920_v31 }
 0x1e4   :  { %v925_v42 = vpop.f32.mrf.mxu3 }
 0x1e5   :  { %v926_v45 = vadd.f32 %v925_v42, %v837_v40  ;;  %v2482_v40 = vld [vmem:[#allocation3 + $0xc4] sm:$0xf0] }
 0x1e6   :  { %v839_v50 = vpop.f32.mrf.mxu2 }
 0x1e7   :  { %v1004_v62 = vmax.f32 %v926_v45, 0.0  ;;  %v840_v19 = vadd.f32 %v2917_v56, %v839_v50  ;;  %v2944_v50 = vor.u32 %v2482_v40, %v2363_v38  ;;  %v2485_v38 = vld [vmem:[#allocation3 + $0xe4] sm:$0xf]  ;;  %v2381_v40 = vld [vmem:[#allocation3 + $0xe8] sm:$0xf0] }
 0x1e9   :  { %967 = vmatmul.bf16.gmra.mxu3 %v2924_v49  ;;  %v1035_v5 = vpack.c.bf16 %v1004_v62, %v1003_v60  ;;  %v2481_v60 = vld [vmem:[#allocation3 + $0xc4] sm:$0xf]  ;;  %v2365_v62 = vld [vmem:[#allocation3 + $0xc8] sm:$0xf0] }
 0x1eb   :  { %1123 = vmatmul.bf16.vlgmr.msrb.gmra.mxu0 %v1035_v5 }
 0x1ec   :  { %v928_v6 = vpop.f32.mrf.mxu3 }
 0x1ed   :  { %v929_v47 = vadd.f32 %v928_v6, %v840_v19 }
 0x1ee   :  { %v841_v18 = vpop.f32.mrf.mxu2 }
 0x1ef   :  { %v842_v48 = vadd.f32 %v2917_v56, %v841_v18  ;;  %v1005_v0 = vmax.f32 %v929_v47, 0.0  ;;  %v2948_v18 = vor.u32 %v2481_v60, %v2365_v62 }
 0x1f3   :  { %883 = vmatmul.bf16.gmra.mxu2 %v2928_v26 }
 0x1f4   :  { %v930_v43 = vpop.f32.mrf.mxu3 }
 0x1f5   :  { %v931_v53 = vadd.f32 %v930_v43, %v842_v48  ;;  %v2371_v43 = vld [vmem:[#allocation3 + $0xd0] sm:$0xf] }
 0x1f6   :  { %v844_v35 = vpop.f32.mrf.mxu2 }
 0x1f7   :  { %v1006_v51 = vmax.f32 %v931_v53, 0.0  ;;  %v845_v21 = vadd.f32 %v2917_v56, %v844_v35  ;;  %v2484_v53 = vld [vmem:[#allocation3 + $0xd4] sm:$0xf0] }
 0x1f9   :  { %972 = vmatmul.bf16.gmra.mxu3 %v2932_v39  ;;  %v1036_v54 = vpack.c.bf16 %v1006_v51, %v1005_v0  ;;  %v2952_v51 = vor.u32 %v2484_v53, %v2371_v43 }
 0x1fb   :  { %1128 = vmatmul.bf16.gmra.mxu0 %v1036_v54  ;;  %v2483_v54 = vld [vmem:[#allocation3 + $0xd4] sm:$0xf] }
 0x1fc   :  { %v933_v57 = vpop.f32.mrf.mxu3 }
 0x1fd   :  { %v934_v20 = vadd.f32 %v933_v57, %v845_v21  ;;  %v2373_v57 = vld [vmem:[#allocation3 + $0xd8] sm:$0xf0] }
 0x1fe   :  { %v846_v17 = vpop.f32.mrf.mxu2  ;;  %v2956_v7 = vor.u32 %v2483_v54, %v2373_v57 }
 0x1ff   :  { %v847_v23 = vadd.f32 %v2917_v56, %v846_v17  ;;  %v1007_v4 = vmax.f32 %v934_v20, 0.0 }
 0x203   :  { %888 = vmatmul.bf16.gmra.mxu2 %v2936_v2 }
 0x204   :  { %v935_v55 = vpop.f32.mrf.mxu3 }
 0x205   :  { %v936_v61 = vadd.f32 %v935_v55, %v847_v23 }
 0x206   :  { %v849_v3 = vpop.f32.mrf.mxu2 }
 0x207   :  { %v1008_v30 = vmax.f32 %v936_v61, 0.0  ;;  %v850_v45 = vadd.f32 %v2917_v56, %v849_v3  ;;  %v2379_v3 = vld [vmem:[#allocation3 + $0xe0] sm:$0xf] }
 0x209   :  { %977 = vmatmul.bf16.gmra.mxu3 %v2940_v27  ;;  %v1037_v33 = vpack.c.bf16 %v1008_v30, %v1007_v4  ;;  %v2486_v4 = vld [vmem:[#allocation3 + $0xe4] sm:$0xf0] }
 0x20b   :  { %1133 = vmatmul.bf16.gmra.mxu0 %v1037_v33 }
 0x20c   :  { %v938_v34 = vpop.f32.mrf.mxu3 }
 0x20d   :  { %v939_v5 = vadd.f32 %v938_v34, %v850_v45  ;;  %v2960_v34 = vor.u32 %v2486_v4, %v2379_v3 }
 0x20e   :  { %v851_v42 = vpop.f32.mrf.mxu2 }
 0x20f   :  { %v852_v6 = vadd.f32 %v2917_v56, %v851_v42  ;;  %v1009_v28 = vmax.f32 %v939_v5, 0.0  ;;  %v2964_v5 = vor.u32 %v2485_v38, %v2381_v40 }
 0x213   :  { %893 = vmatmul.bf16.gmra.mxu2 %v2944_v50 }
 0x214   :  { %v940_v9 = vpop.f32.mrf.mxu3 }
 0x215   :  { %v941_v15 = vadd.f32 %v940_v9, %v852_v6 }
 0x216   :  { %v854_v19 = vpop.f32.mrf.mxu2 }
 0x217   :  { %v1010_v52 = vmax.f32 %v941_v15, 0.0  ;;  %v855_v0 = vadd.f32 %v2917_v56, %v854_v19 }
 0x219   :  { %982 = vmatmul.bf16.gmra.mxu3 %v2948_v18  ;;  %v1038_v47 = vpack.c.bf16 %v1010_v52, %v1009_v28  ;;  %v2387_v52 = vld [vmem:[#allocation3 + $0xf0] sm:$0xf] }
 0x21b   :  { %1138 = vmatmul.bf16.gmra.mxu0 %v1038_v47  ;;  %v2488_v47 = vld [vmem:[#allocation3 + $0xf4] sm:$0xf0] }
 0x21c   :  { %v943_v48 = vpop.f32.mrf.mxu3  ;;  %v2968_v53 = vor.u32 %v2488_v47, %v2387_v52 }
 0x21d   :  { %v944_v58 = vadd.f32 %v943_v48, %v855_v0  ;;  %v2389_v0 = vld [vmem:[#allocation3 + $0xf8] sm:$0xf0] }
 0x21e   :  { %v856_v35 = vpop.f32.mrf.mxu2 }
 0x21f   :  { %v857_v12 = vadd.f32 %v2917_v56, %v856_v35  ;;  %v1011_v20 = vmax.f32 %v944_v58, 0.0  ;;  %v2487_v35 = vld [vmem:[#allocation3 + $0xf4] sm:$0xf] }
 0x223   :  { %898 = vmatmul.bf16.gmra.mxu2 %v2952_v51 }
 0x224   :  { %v945_v17 = vpop.f32.mrf.mxu3 }
 0x225   :  { %v946_v21 = vadd.f32 %v945_v17, %v857_v12  ;;  %v2972_v17 = vor.u32 %v2487_v35, %v2389_v0 }
 0x226   :  { %v859_v22 = vpop.f32.mrf.mxu2 }
 0x227   :  { %v1012_v23 = vmax.f32 %v946_v21, 0.0  ;;  %v860_v33 = vadd.f32 %v2917_v56, %v859_v22 }
 0x229   :  { %987 = vmatmul.bf16.gmra.mxu3 %v2956_v7  ;;  %v1039_v55 = vpack.c.bf16 %v1012_v23, %v1011_v20 }
 0x22b   :  { %1143 = vmatmul.bf16.gmra.mxu0 %v1039_v55 }
 0x22c   :  { %v948_v61 = vpop.f32.mrf.mxu3 }
 0x22d   :  { %v949_v42 = vadd.f32 %v948_v61, %v860_v33 }
 0x22e   :  { %v861_v30 = vpop.f32.mrf.mxu2 }
 0x22f   :  { %v862_v45 = vadd.f32 %v2917_v56, %v861_v30  ;;  %v1013_v9 = vmax.f32 %v949_v42, 0.0 }
 0x233   :  { %903 = vmatmul.bf16.gmra.mxu2 %v2960_v34 }
 0x234   :  { %v950_v60 = vpop.f32.mrf.mxu3 }
 0x235   :  { %v951_v62 = vadd.f32 %v950_v60, %v862_v45 }
 0x236   :  { %v864_v6 = vpop.f32.mrf.mxu2 }
 0x237   :  { %v1014_v15 = vmax.f32 %v951_v62, 0.0  ;;  %v865_v43 = vadd.f32 %v2917_v56, %v864_v6 }
 0x239   :  { %992 = vmatmul.bf16.gmra.mxu3 %v2964_v5  ;;  %v1040_v19 = vpack.c.bf16 %v1014_v15, %v1013_v9 }
 0x23b   :  { %1148 = vmatmul.bf16.gmra.mxu0 %v1040_v19 }
 0x23c   :  { %v953_v28 = vpop.f32.mrf.mxu3 }
 0x23d   :  { %v954_v54 = vadd.f32 %v953_v28, %v865_v43 }
 0x23e   :  { %v866_v48 = vpop.f32.mrf.mxu2 }
 0x23f   :  { %v867_v57 = vadd.f32 %v2917_v56, %v866_v48  ;;  %v1015_v22 = vmax.f32 %v954_v54, 0.0 }
 0x243   :  { %908 = vmatmul.bf16.gmra.mxu2 %v2968_v53 }
 0x244   :  { %v955_v58 = vpop.f32.mrf.mxu3 }
 0x245   :  { %v956_v12 = vadd.f32 %v955_v58, %v867_v57 }
 0x246   :  { %v869_v21 = vpop.f32.mrf.mxu2 }
 0x247   :  { %v1016_v20 = vmax.f32 %v956_v12, 0.0  ;;  %v870_v3 = vadd.f32 %v2917_v56, %v869_v21 }
 0x249   :  { %997 = vmatmul.bf16.gmra.mxu3 %v2972_v17  ;;  %v1041_v23 = vpack.c.bf16 %v1016_v20, %v1015_v22 }
 0x24b   :  { %1153 = vmatmul.bf16.gmra.mxu0 %v1041_v23 }
 0x24c   :  { %v958_v55 = vpop.f32.mrf.mxu3 }
 0x24d   :  { %v959_v4 = vadd.f32 %v958_v55, %v870_v3 }
 0x24e   :  { %v871_v61 = vpop.f32.mrf.mxu2 }
 0x24f   :  { %v872_v30 = vadd.f32 %v2917_v56, %v871_v61  ;;  %v1017_v42 = vmax.f32 %v959_v4, 0.0 }
 0x254   :  { %v960_v33 = vpop.f32.mrf.mxu3 }
 0x255   :  { %v961_v38 = vadd.f32 %v960_v33, %v872_v30 }
 0x256   :  { %v874_v40 = vpop.f32.mrf.mxu2 }
 0x257   :  { %v1018_v45 = vmax.f32 %v961_v38, 0.0  ;;  %v875_v9 = vadd.f32 %v2917_v56, %v874_v40 }
 0x259   :  { %v1042_v60 = vpack.c.bf16 %v1018_v45, %v1017_v42 }
 0x25b   :  { %1158 = vmatmul.bf16.gmra.mxu0 %v1042_v60 }
 0x25c   :  { %v963_v62 = vpop.f32.mrf.mxu3 }
 0x25d   :  { %v964_v15 = vadd.f32 %v963_v62, %v875_v9 }
 0x25e   :  { %v876_v6 = vpop.f32.mrf.mxu2 }
 0x25f   :  { %v877_v19 = vadd.f32 %v2917_v56, %v876_v6  ;;  %v1019_v48 = vmax.f32 %v964_v15, 0.0 }
 0x264   :  { %v965_v28 = vpop.f32.mrf.mxu3 }
 0x265   :  { %v966_v52 = vadd.f32 %v965_v28, %v877_v19 }
 0x266   :  { %v879_v47 = vpop.f32.mrf.mxu2 }
 0x267   :  { %v1020_v43 = vmax.f32 %v966_v52, 0.0  ;;  %v880_v58 = vadd.f32 %v2917_v56, %v879_v47 }
 0x268   :  { %v2979_v35 = vpop.f32.mrf.mxu0 }
 0x269   :  { %v1043_v0 = vpack.c.bf16 %v1020_v43, %v1019_v48 }
 0x26b   :  { %1163 = vmatmul.bf16.gmra.mxu0 %v1043_v0 }
 0x26c   :  { %v968_v54 = vpop.f32.mrf.mxu3 }
 0x26d   :  { %v969_v22 = vadd.f32 %v968_v54, %v880_v58 }
 0x26e   :  { %v881_v57 = vpop.f32.mrf.mxu2 }
 0x26f   :  { %v882_v20 = vadd.f32 %v2917_v56, %v881_v57  ;;  %v1021_v3 = vmax.f32 %v969_v22, 0.0 }
 0x270   :  { %v2982_v12 = vpop.f32.mrf.mxu0 }
 0x274   :  { %v970_v23 = vpop.f32.mrf.mxu3 }
 0x275   :  { %v971_v55 = vadd.f32 %v970_v23, %v882_v20 }
 0x276   :  { %v884_v61 = vpop.f32.mrf.mxu2 }
 0x277   :  { %v1022_v4 = vmax.f32 %v971_v55, 0.0  ;;  %v885_v42 = vadd.f32 %v2917_v56, %v884_v61 }
 0x278   :  { %v2987_v30 = vpop.f32.mrf.mxu0 }
 0x279   :  { %v1044_v33 = vpack.c.bf16 %v1022_v4, %v1021_v3 }
 0x27b   :  { %1168 = vmatmul.bf16.gmra.mxu0 %v1044_v33 }
 0x27c   :  { %v973_v38 = vpop.f32.mrf.mxu3 }
 0x27d   :  { %v974_v62 = vadd.f32 %v973_v38, %v885_v42 }
 0x27e   :  { %v886_v40 = vpop.f32.mrf.mxu2 }
 0x27f   :  { %v887_v6 = vadd.f32 %v2917_v56, %v886_v40  ;;  %v1023_v28 = vmax.f32 %v974_v62, 0.0 }
 0x280   :  { %v2990_v45 = vpop.f32.mrf.mxu0 }
 0x284   :  { %v975_v9 = vpop.f32.mrf.mxu3 }
 0x285   :  { %v976_v15 = vadd.f32 %v975_v9, %v887_v6 }
 0x286   :  { %v889_v19 = vpop.f32.mrf.mxu2 }
 0x287   :  { %v1024_v52 = vmax.f32 %v976_v15, 0.0  ;;  %v890_v54 = vadd.f32 %v2917_v56, %v889_v19 }
 0x288   :  { %v2995_v47 = vpop.f32.mrf.mxu0 }
 0x289   :  { %v1045_v48 = vpack.c.bf16 %v1024_v52, %v1023_v28 }
 0x28b   :  { %1173 = vmatmul.bf16.gmra.mxu0 %v1045_v48 }
 0x28c   :  { %v978_v43 = vpop.f32.mrf.mxu3 }
 0x28d   :  { %v979_v22 = vadd.f32 %v978_v43, %v890_v54 }
 0x28e   :  { %v891_v0 = vpop.f32.mrf.mxu2 }
 0x28f   :  { %v892_v20 = vadd.f32 %v2917_v56, %v891_v0  ;;  %v1025_v3 = vmax.f32 %v979_v22, 0.0 }
 0x290   :  { %v2998_v57 = vpop.f32.mrf.mxu0 }
 0x294   :  { %v980_v23 = vpop.f32.mrf.mxu3 }
 0x295   :  { %v981_v55 = vadd.f32 %v980_v23, %v892_v20 }
 0x296   :  { %v894_v61 = vpop.f32.mrf.mxu2 }
 0x297   :  { %v1026_v4 = vmax.f32 %v981_v55, 0.0  ;;  %v895_v62 = vadd.f32 %v2917_v56, %v894_v61 }
 0x298   :  { %v3003_v33 = vpop.f32.mrf.mxu0 }
 0x299   :  { %v1046_v38 = vpack.c.bf16 %v1026_v4, %v1025_v3 }
 0x29b   :  { %1178 = vmatmul.bf16.gmra.mxu0 %v1046_v38 }
 0x29c   :  { %v983_v40 = vpop.f32.mrf.mxu3 }
 0x29d   :  { %v984_v15 = vadd.f32 %v983_v40, %v895_v62 }
 0x29e   :  { %v896_v42 = vpop.f32.mrf.mxu2 }
 0x29f   :  { %v897_v19 = vadd.f32 %v2917_v56, %v896_v42  ;;  %v1027_v43 = vmax.f32 %v984_v15, 0.0 }
 0x2a0   :  { %v3006_v6 = vpop.f32.mrf.mxu0 }
 0x2a1   :  { %v1207_v9 = vpack.c.bf16 %v3006_v6, %v3003_v33 }
 0x2a4   :  { %v985_v28 = vpop.f32.mrf.mxu3 }
 0x2a5   :  { %v986_v52 = vadd.f32 %v985_v28, %v897_v19 }
 0x2a6   :  { %v899_v48 = vpop.f32.mrf.mxu2 }
 0x2a7   :  { %v1028_v0 = vmax.f32 %v986_v52, 0.0  ;;  %v900_v55 = vadd.f32 %v2917_v56, %v899_v48 }
 0x2a8   :  { %v1144_v54 = vpop.f32.mrf.mxu0 }
 0x2a9   :  { %v1047_v22 = vpack.c.bf16 %v1028_v0, %v1027_v43 }
 0x2ab   :  { %1183 = vmatmul.bf16.gmra.mxu0 %v1047_v22 }
 0x2ac   :  { %v988_v20 = vpop.f32.mrf.mxu3 }
 0x2ad   :  { %v989_v3 = vadd.f32 %v988_v20, %v900_v55 }
 0x2ae   :  { %v901_v23 = vpop.f32.mrf.mxu2 }
 0x2af   :  { %v902_v4 = vadd.f32 %v2917_v56, %v901_v23  ;;  %v1029_v42 = vmax.f32 %v989_v3, 0.0 }
 0x2b0   :  { %v1146_v61 = vpop.f32.mrf.mxu0 }
 0x2b4   :  { %v990_v33 = vpop.f32.mrf.mxu3 }
 0x2b5   :  { %v991_v38 = vadd.f32 %v990_v33, %v902_v4 }
 0x2b6   :  { %v904_v40 = vpop.f32.mrf.mxu2 }
 0x2b7   :  { %v1030_v62 = vmax.f32 %v991_v38, 0.0  ;;  %v905_v52 = vadd.f32 %v2917_v56, %v904_v40 }
 0x2b8   :  { %v1149_v6 = vpop.f32.mrf.mxu0 }
 0x2b9   :  { %v1048_v19 = vpack.c.bf16 %v1030_v62, %v1029_v42 }
 0x2bb   :  { %1188 = vmatmul.bf16.gmra.mxu0 %v1048_v19 }
 0x2bc   :  { %v993_v15 = vpop.f32.mrf.mxu3 }
 0x2bd   :  { %v994_v0 = vadd.f32 %v993_v15, %v905_v52 }
 0x2be   :  { %v906_v28 = vpop.f32.mrf.mxu2 }
 0x2bf   :  { %v907_v48 = vadd.f32 %v2917_v56, %v906_v28  ;;  %v1031_v23 = vmax.f32 %v994_v0, 0.0 }
 0x2c0   :  { %v1151_v43 = vpop.f32.mrf.mxu0 }
 0x2c4   :  { %v995_v22 = vpop.f32.mrf.mxu3 }
 0x2c5   :  { %v996_v20 = vadd.f32 %v995_v22, %v907_v48 }
 0x2c6   :  { %v909_v55 = vpop.f32.mrf.mxu2 }
 0x2c7   :  { %v1032_v21 = vmax.f32 %v996_v20, 0.0  ;;  %v910_v38 = vadd.f32 %v2917_v56, %v909_v55  ;;  %v1208_v55 = vpack.c.bf16 %v1146_v61, %v1144_v54 }
 0x2c8   :  { %v1154_v4 = vpop.f32.mrf.mxu0 }
 0x2c9   :  { %v1049_v33 = vpack.c.bf16 %v1032_v21, %v1031_v23  ;;  %v1209_v23 = vpack.c.bf16 %v1151_v43, %v1149_v6 }
 0x2cb   :  { %1193 = vmatmul.bf16.gmra.mxu0 %v1049_v33 }
 0x2cc   :  { %v998_v3 = vpop.f32.mrf.mxu3 }
 0x2cd   :  { %v999_v19 = vadd.f32 %v998_v3, %v910_v38  ;;  %v3415_v3 = vpack.c.bf16 %v2990_v45, %v2987_v30 }
 0x2ce   :  { %v911_v42 = vpop.f32.mrf.mxu2 }
 0x2cf   :  { %v912_v40 = vadd.f32 %v2917_v56, %v911_v42  ;;  %v1033_v52 = vmax.f32 %v999_v19, 0.0  ;;  %v3414_v56 = vpack.c.bf16 %v2998_v57, %v2995_v47 }
 0x2d0   :  { %v1156_v62 = vpop.f32.mrf.mxu0 }
 0x2d1   :  { %v1210_v21 = vpack.c.bf16 %v1156_v62, %v1154_v4 }
 0x2d4   :  { %v1000_v60 = vpop.f32.mrf.mxu3 }
 0x2d5   :  { %v1001_v15 = vadd.f32 %v1000_v60, %v912_v40 }
 0x2d7   :  { %v1034_v28 = vmax.f32 %v1001_v15, 0.0 }
 0x2d8   :  { %v1159_v58 = vpop.f32.mrf.mxu0 }
 0x2d9   :  { %v1050_v48 = vpack.c.bf16 %v1034_v28, %v1033_v52 }
 0x2db   :  { %1198 = vmatmul.bf16.gmra.mxu0 %v1050_v48 }
 0x2e0   :  { %v1161_v0 = vpop.f32.mrf.mxu0 }
 0x2e1   :  { %v1211_v22 = vpack.c.bf16 %v1161_v0, %v1159_v58  ;;  %v3416_v58 = vpack.c.bf16 %v2982_v12, %v2979_v35  ;;  %v2552_v0 = vld [vmem:[#allocation10 + $0x38] sm:$0xff] }
 0x2e2   :  { %1514 = vmatpush.bf16.msra.mxu3 %v2552_v0 }
 0x2e3   :  { %1224 = vmatpush.bf16.msrb.mxu1 %v1211_v22  ;;  %v2551_v22 = vld [vmem:[#allocation10 + $0x30] sm:$0xff] }
 0x2e6   :  { %1515 = vmatpush.bf16.msra.mxu3 %v2551_v22 }
 0x2e7   :  { %1225 = vmatpush.bf16.msrb.mxu1 %v1210_v21 }
 0x2e8   :  { %v1164_v20 = vpop.f32.mrf.mxu0 }
 0x2eb   :  { %1226 = vmatpush.bf16.msrb.mxu1 %v1209_v23  ;;  %v2549_v23 = vld [vmem:[#allocation10 + $0x20] sm:$0xff] }
 0x2ef   :  { %1227 = vmatpush.bf16.msrb.mxu1 %v1208_v55 }
 0x2f0   :  { %v1166_v33 = vpop.f32.mrf.mxu0 }
 0x2f1   :  { %v1212_v48 = vpack.c.bf16 %v1166_v33, %v1164_v20  ;;  %v2550_v20 = vld [vmem:[#allocation10 + $0x28] sm:$0xff]  ;;  %v2548_v33 = vld [vmem:[#allocation10 + $0x18] sm:$0xff] }
 0x2f2   :  { %1516 = vmatpush.bf16.msra.mxu3 %v2550_v20 }
 0x2f3   :  { %1228 = vmatpush.bf16.msrb.mxu1 %v1207_v9 }
 0x2f6   :  { %1517 = vmatpush.bf16.msra.mxu3 %v2549_v23 }
 0x2f7   :  { %1229 = vmatpush.bf16.msrb.mxu1 %v3414_v56  ;;  %v2547_v56 = vld [vmem:[#allocation10 + $0x10] sm:$0xff] }
 0x2f8   :  { %v1169_v60 = vpop.f32.mrf.mxu0 }
 0x2fa   :  { %1518 = vmatpush.bf16.msra.mxu3 %v2548_v33 }
 0x2fb   :  { %1230 = vmatpush.bf16.msrb.mxu1 %v3415_v3  ;;  %v2546_v3 = vld [vmem:[#allocation10 + $0x8] sm:$0xff] }
 0x2fe   :  { %1519 = vmatpush.bf16.msra.mxu3 %v2547_v56 }
 0x2ff   :  { %1231 = vmatpush.bf16.msrb.mxu1 %v3416_v58  ;;  %v2545_v58 = vld [vmem:[#allocation10] sm:$0xff] }
 0x300   :  { %v1171_v4 = vpop.f32.mrf.mxu0 }
 0x301   :  { %v1213_v28 = vpack.c.bf16 %v1171_v4, %v1169_v60 }
 0x302   :  { %1232 = vmatmul.bf16.vlgmr.msrb.gmra.mxu1 %v2856_v14  ;;  %1520 = vmatpush.bf16.msra.mxu3 %v2546_v3 }
 0x306   :  { %1521 = vmatpush.bf16.msra.mxu3 %v2545_v58 }
 0x308   :  { %v1174_v54 = vpop.f32.mrf.mxu0 }
 0x310   :  { %v1176_v61 = vpop.f32.mrf.mxu0 }
 0x311   :  { %v1214_v52 = vpack.c.bf16 %v1176_v61, %v1174_v54 }
 0x312   :  { %1237 = vmatmul.bf16.gmra.mxu1 %v2866_v32 }
 0x318   :  { %v1179_v9 = vpop.f32.mrf.mxu0 }
 0x320   :  { %v1181_v6 = vpop.f32.mrf.mxu0 }
 0x321   :  { %v1215_v15 = vpack.c.bf16 %v1181_v6, %v1179_v9  ;;  %v3053_v9 = vld [vmem:[%s3398_s5] ss:$0 sm:$0xff] }
 0x322   :  { %1242 = vmatmul.bf16.gmra.mxu1 %v2872_v41 }
 0x328   :  { %v1184_v47 = vpop.f32.mrf.mxu0 }
 0x330   :  { %v1186_v57 = vpop.f32.mrf.mxu0 }
 0x331   :  { %v1216_v40 = vpack.c.bf16 %v1186_v57, %v1184_v47 }
 0x332   :  { %1247 = vmatmul.bf16.gmra.mxu1 %v2878_v59 }
 0x338   :  { %v1189_v30 = vpop.f32.mrf.mxu0 }
 0x340   :  { %v1191_v45 = vpop.f32.mrf.mxu0 }
 0x341   :  { %v1217_v19 = vpack.c.bf16 %v1191_v45, %v1189_v30 }
 0x342   :  { %1252 = vmatmul.bf16.gmra.mxu1 %v2884_v8 }
 0x348   :  { %v1194_v35 = vpop.f32.mrf.mxu0 }
 0x350   :  { %v1196_v12 = vpop.f32.mrf.mxu0 }
 0x351   :  { %v1218_v62 = vpack.c.bf16 %v1196_v12, %v1194_v35 }
 0x352   :  { %1257 = vmatmul.bf16.gmra.mxu1 %v2890_v25 }
 0x358   :  { %v1199_v43 = vpop.f32.mrf.mxu0 }
 0x360   :  { %v1201_v38 = vpop.f32.mrf.mxu0 }
 0x361   :  { %v1219_v42 = vpack.c.bf16 %v1201_v38, %v1199_v43 }
 0x362   :  { %1262 = vmatmul.bf16.gmra.mxu1 %v2896_v44 }
 0x363   :  { %1313 = vmatpush.bf16.msra.mxu2 %v1219_v42 }
 0x367   :  { %1314 = vmatpush.bf16.msra.mxu2 %v1218_v62 }
 0x36b   :  { %1315 = vmatpush.bf16.msra.mxu2 %v1217_v19 }
 0x36f   :  { %1316 = vmatpush.bf16.msra.mxu2 %v1216_v40 }
 0x372   :  { %1267 = vmatmul.bf16.gmra.mxu1 %v2902_v11 }
 0x373   :  { %1317 = vmatpush.bf16.msra.mxu2 %v1215_v15 }
 0x377   :  { %1318 = vmatpush.bf16.msra.mxu2 %v1214_v52 }
 0x37b   :  { %1319 = vmatpush.bf16.msra.mxu2 %v1213_v28 }
 0x37f   :  { %1320 = vmatpush.bf16.msra.mxu2 %v1212_v48  ;;  %v1233_v21 = vpop.f32.mrf.mxu1 }
 0x380   :  { %v1234_v47 = vadd.f32 %v3053_v9, %v1233_v21 }
 0x382   :  { %1321 = vmatmul.bf16.vlgmr.msra.gmra.mxu2 %v2863_v10  ;;  %1272 = vmatmul.bf16.gmra.mxu1 %v2908_v13 }
 0x387   :  { %v1235_v55 = vpop.f32.mrf.mxu1 }
 0x388   :  { %v1236_v30 = vadd.f32 %v3053_v9, %v1235_v55 }
 0x38f   :  { %v1238_v60 = vpop.f32.mrf.mxu1 }
 0x390   :  { %v1239_v40 = vadd.f32 %v3053_v9, %v1238_v60 }
 0x392   :  { %1326 = vmatmul.bf16.gmra.mxu2 %v2869_v37  ;;  %1277 = vmatmul.bf16.gmra.mxu1 %v2920_v31 }
 0x397   :  { %v1240_v4 = vpop.f32.mrf.mxu1 }
 0x398   :  { %v1241_v52 = vadd.f32 %v3053_v9, %v1240_v4 }
 0x39f   :  { %v1243_v54 = vpop.f32.mrf.mxu1 }
 0x3a0   :  { %v1244_v33 = vadd.f32 %v3053_v9, %v1243_v54 }
 0x3a2   :  { %1331 = vmatmul.bf16.gmra.mxu2 %v2875_v46  ;;  %1282 = vmatmul.bf16.gmra.mxu1 %v2928_v26 }
 0x3a7   :  { %v1245_v61 = vpop.f32.mrf.mxu1 }
 0x3a8   :  { %v1246_v3 = vadd.f32 %v3053_v9, %v1245_v61 }
 0x3af   :  { %v1248_v57 = vpop.f32.mrf.mxu1 }
 0x3b2   :  { %1336 = vmatmul.bf16.gmra.mxu2 %v2881_v63  ;;  %1287 = vmatmul.bf16.gmra.mxu1 %v2936_v2 }
 0x3b7   :  { %v1250_v62 = vpop.f32.mrf.mxu1 }
 0x3bf   :  { %v1253_v15 = vpop.f32.mrf.mxu1 }
 0x3c2   :  { %1341 = vmatmul.bf16.gmra.mxu2 %v2887_v16  ;;  %1292 = vmatmul.bf16.gmra.mxu1 %v2944_v50 }
 0x3c7   :  { %v1255_v23 = vpop.f32.mrf.mxu1 }
 0x3cf   :  { %v1258_v56 = vpop.f32.mrf.mxu1 }
 0x3d2   :  { %1346 = vmatmul.bf16.gmra.mxu2 %v2893_v29  ;;  %1297 = vmatmul.bf16.gmra.mxu1 %v2952_v51 }
 0x3e2   :  { %1351 = vmatmul.bf16.gmra.mxu2 %v2899_v36  ;;  %1302 = vmatmul.bf16.gmra.mxu1 %v2960_v34 }
 0x3f2   :  { %1356 = vmatmul.bf16.gmra.mxu2 %v2905_v1  ;;  %1307 = vmatmul.bf16.gmra.mxu1 %v2968_v53 }
 0x402   :  { %1361 = vmatmul.bf16.gmra.mxu2 %v2911_v24 }
 0x405   :  { %v1322_v6 = vpop.f32.mrf.mxu2 }
 0x406   :  { %v1323_v45 = vadd.f32 %v1322_v6, %v1234_v47 }
 0x408   :  { %v1402_v43 = vmax.f32 %v1323_v45, 0.0  ;;  %v1260_v45 = vpop.f32.mrf.mxu1 }
 0x40d   :  { %v1324_v35 = vpop.f32.mrf.mxu2 }
 0x40e   :  { %v1325_v12 = vadd.f32 %v1324_v35, %v1236_v30 }
 0x410   :  { %v1403_v38 = vmax.f32 %v1325_v12, 0.0  ;;  %v1249_v12 = vadd.f32 %v3053_v9, %v1248_v57 }
 0x412   :  { %v1434_v42 = vpack.c.bf16 %v1403_v38, %v1402_v43  ;;  %1366 = vmatmul.bf16.gmra.mxu2 %v2924_v49  ;;  %v1263_v43 = vpop.f32.mrf.mxu1  ;;  %v1251_v38 = vadd.f32 %v3053_v9, %v1250_v62 }
 0x414   :  { %1522 = vmatmul.bf16.vlgmr.msra.gmra.mxu3 %v1434_v42 }
 0x415   :  { %v1327_v19 = vpop.f32.mrf.mxu2 }
 0x416   :  { %v1328_v28 = vadd.f32 %v1327_v19, %v1239_v40 }
 0x418   :  { %v1404_v22 = vmax.f32 %v1328_v28, 0.0 }
 0x41d   :  { %v1329_v48 = vpop.f32.mrf.mxu2 }
 0x41e   :  { %v1330_v0 = vadd.f32 %v1329_v48, %v1241_v52  ;;  %v1265_v48 = vpop.f32.mrf.mxu1 }
 0x420   :  { %v1405_v21 = vmax.f32 %v1330_v0, 0.0  ;;  %v1254_v0 = vadd.f32 %v3053_v9, %v1253_v15 }
 0x422   :  { %1371 = vmatmul.bf16.gmra.mxu2 %v2932_v39  ;;  %v1435_v20 = vpack.c.bf16 %v1405_v21, %v1404_v22  ;;  %v1256_v22 = vadd.f32 %v3053_v9, %v1255_v23 }
 0x424   :  { %1527 = vmatmul.bf16.gmra.mxu3 %v1435_v20 }
 0x425   :  { %v1332_v55 = vpop.f32.mrf.mxu2 }
 0x426   :  { %v1333_v60 = vadd.f32 %v1332_v55, %v1244_v33  ;;  %v1268_v55 = vpop.f32.mrf.mxu1 }
 0x428   :  { %v1406_v4 = vmax.f32 %v1333_v60, 0.0 }
 0x42d   :  { %v1334_v58 = vpop.f32.mrf.mxu2 }
 0x42e   :  { %v1335_v6 = vadd.f32 %v1334_v58, %v1246_v3  ;;  %v1259_v58 = vadd.f32 %v3053_v9, %v1258_v56 }
 0x430   :  { %v1407_v47 = vmax.f32 %v1335_v6, 0.0  ;;  %v1270_v6 = vpop.f32.mrf.mxu1 }
 0x432   :  { %1376 = vmatmul.bf16.gmra.mxu2 %v2940_v27  ;;  %v1436_v30 = vpack.c.bf16 %v1407_v47, %v1406_v4  ;;  %v1261_v4 = vadd.f32 %v3053_v9, %v1260_v45 }
 0x434   :  { %1532 = vmatmul.bf16.gmra.mxu3 %v1436_v30 }
 0x435   :  { %v1337_v35 = vpop.f32.mrf.mxu2 }
 0x436   :  { %v1338_v54 = vadd.f32 %v1337_v35, %v1249_v12 }
 0x438   :  { %v1408_v61 = vmax.f32 %v1338_v54, 0.0 }
 0x43d   :  { %v1339_v42 = vpop.f32.mrf.mxu2 }
 0x43e   :  { %v1340_v19 = vadd.f32 %v1339_v42, %v1251_v38  ;;  %v1273_v38 = vpop.f32.mrf.mxu1  ;;  %v1264_v42 = vadd.f32 %v3053_v9, %v1263_v43 }
 0x440   :  { %v1409_v40 = vmax.f32 %v1340_v19, 0.0  ;;  %v1266_v19 = vadd.f32 %v3053_v9, %v1265_v48 }
 0x442   :  { %1381 = vmatmul.bf16.gmra.mxu2 %v2948_v18  ;;  %v1437_v52 = vpack.c.bf16 %v1409_v40, %v1408_v61 }
 0x444   :  { %1537 = vmatmul.bf16.gmra.mxu3 %v1437_v52 }
 0x445   :  { %v1342_v28 = vpop.f32.mrf.mxu2 }
 0x446   :  { %v1343_v21 = vadd.f32 %v1342_v28, %v1254_v0  ;;  %v1275_v40 = vpop.f32.mrf.mxu1 }
 0x448   :  { %v1410_v62 = vmax.f32 %v1343_v21, 0.0 }
 0x44d   :  { %v1344_v57 = vpop.f32.mrf.mxu2 }
 0x44e   :  { %v1345_v20 = vadd.f32 %v1344_v57, %v1256_v22  ;;  %v1278_v21 = vpop.f32.mrf.mxu1  ;;  %v1269_v57 = vadd.f32 %v3053_v9, %v1268_v55 }
 0x450   :  { %v1411_v33 = vmax.f32 %v1345_v20, 0.0  ;;  %v1271_v20 = vadd.f32 %v3053_v9, %v1270_v6 }
 0x452   :  { %v1438_v3 = vpack.c.bf16 %v1411_v33, %v1410_v62  ;;  %1386 = vmatmul.bf16.gmra.mxu2 %v2956_v7 }
 0x454   :  { %1542 = vmatmul.bf16.gmra.mxu3 %v1438_v3 }
 0x455   :  { %v1347_v60 = vpop.f32.mrf.mxu2 }
 0x456   :  { %v1348_v47 = vadd.f32 %v1347_v60, %v1259_v58  ;;  %v1280_v60 = vpop.f32.mrf.mxu1 }
 0x458   :  { %v1412_v23 = vmax.f32 %v1348_v47, 0.0  ;;  %v1274_v47 = vadd.f32 %v3053_v9, %v1273_v38 }
 0x45d   :  { %v1349_v15 = vpop.f32.mrf.mxu2 }
 0x45e   :  { %v1350_v30 = vadd.f32 %v1349_v15, %v1261_v4  ;;  %v1283_v15 = vpop.f32.mrf.mxu1 }
 0x460   :  { %v1413_v35 = vmax.f32 %v1350_v30, 0.0  ;;  %v1276_v30 = vadd.f32 %v3053_v9, %v1275_v40 }
 0x462   :  { %v1439_v12 = vpack.c.bf16 %v1413_v35, %v1412_v23  ;;  %1391 = vmatmul.bf16.gmra.mxu2 %v2964_v5 }
 0x464   :  { %1547 = vmatmul.bf16.gmra.mxu3 %v1439_v12 }
 0x465   :  { %v1352_v54 = vpop.f32.mrf.mxu2 }
 0x466   :  { %v1353_v61 = vadd.f32 %v1352_v54, %v1264_v42 }
 0x468   :  { %v1414_v45 = vmax.f32 %v1353_v61, 0.0 }
 0x46d   :  { %v1354_v56 = vpop.f32.mrf.mxu2 }
 0x46e   :  { %v1355_v52 = vadd.f32 %v1354_v56, %v1266_v19  ;;  %v1285_v19 = vpop.f32.mrf.mxu1  ;;  %v1279_v56 = vadd.f32 %v3053_v9, %v1278_v21  ;;  %v1284_v21 = vadd.f32 %v3053_v9, %v1283_v15 }
 0x470   :  { %v1415_v28 = vmax.f32 %v1355_v52, 0.0  ;;  %v1281_v52 = vadd.f32 %v3053_v9, %v1280_v60 }
 0x472   :  { %v1440_v0 = vpack.c.bf16 %v1415_v28, %v1414_v45  ;;  %1396 = vmatmul.bf16.gmra.mxu2 %v2972_v17 }
 0x474   :  { %1552 = vmatmul.bf16.gmra.mxu3 %v1440_v0 }
 0x475   :  { %v1357_v22 = vpop.f32.mrf.mxu2 }
 0x476   :  { %v1358_v62 = vadd.f32 %v1357_v22, %v1269_v57  ;;  %v1288_v40 = vpop.f32.mrf.mxu1 }
 0x477   :  { %v1289_v15 = vadd.f32 %v3053_v9, %v1288_v40 }
 0x478   :  { %v1416_v48 = vmax.f32 %v1358_v62, 0.0 }
 0x47d   :  { %v1359_v43 = vpop.f32.mrf.mxu2 }
 0x47e   :  { %v1360_v33 = vadd.f32 %v1359_v43, %v1271_v20 }
 0x480   :  { %v1417_v3 = vmax.f32 %v1360_v33, 0.0 }
 0x482   :  { %v1441_v58 = vpack.c.bf16 %v1417_v3, %v1416_v48  ;;  %v1290_v48 = vpop.f32.mrf.mxu1  ;;  %v1286_v3 = vadd.f32 %v3053_v9, %v1285_v19 }
 0x484   :  { %1557 = vmatmul.bf16.gmra.mxu3 %v1441_v58 }
 0x485   :  { %v1362_v4 = vpop.f32.mrf.mxu2 }
 0x486   :  { %v1363_v23 = vadd.f32 %v1362_v4, %v1274_v47 }
 0x488   :  { %v1418_v55 = vmax.f32 %v1363_v23, 0.0 }
 0x48d   :  { %v1364_v35 = vpop.f32.mrf.mxu2 }
 0x48e   :  { %v1365_v12 = vadd.f32 %v1364_v35, %v1276_v30 }
 0x490   :  { %v1419_v54 = vmax.f32 %v1365_v12, 0.0 }
 0x492   :  { %v1442_v6 = vpack.c.bf16 %v1419_v54, %v1418_v55  ;;  %v1293_v55 = vpop.f32.mrf.mxu1 }
 0x493   :  { %v1294_v40 = vadd.f32 %v3053_v9, %v1293_v55 }
 0x494   :  { %1562 = vmatmul.bf16.gmra.mxu3 %v1442_v6 }
 0x495   :  { %v1367_v42 = vpop.f32.mrf.mxu2 }
 0x496   :  { %v1368_v45 = vadd.f32 %v1367_v42, %v1279_v56  ;;  %v1291_v42 = vadd.f32 %v3053_v9, %v1290_v48 }
 0x497   :  { %v3081_v61 = vpop.f32.mrf.mxu3 }
 0x498   :  { %v1420_v22 = vmax.f32 %v1368_v45, 0.0 }
 0x49d   :  { %v1369_v38 = vpop.f32.mrf.mxu2 }
 0x49e   :  { %v1370_v28 = vadd.f32 %v1369_v38, %v1281_v52  ;;  %v1295_v52 = vpop.f32.mrf.mxu1 }
 0x49f   :  { %v3085_v0 = vpop.f32.mrf.mxu3  ;;  %v1296_v48 = vadd.f32 %v3053_v9, %v1295_v52 }
 0x4a0   :  { %v1421_v57 = vmax.f32 %v1370_v28, 0.0 }
 0x4a2   :  { %v1443_v62 = vpack.c.bf16 %v1421_v57, %v1420_v22 }
 0x4a4   :  { %1567 = vmatmul.bf16.gmra.mxu3 %v1443_v62 }
 0x4a5   :  { %v1372_v43 = vpop.f32.mrf.mxu2 }
 0x4a6   :  { %v1373_v60 = vadd.f32 %v1372_v43, %v1284_v21 }
 0x4a7   :  { %v3089_v33 = vpop.f32.mrf.mxu3 }
 0x4a8   :  { %v1422_v30 = vmax.f32 %v1373_v60, 0.0 }
 0x4ad   :  { %v1374_v58 = vpop.f32.mrf.mxu2 }
 0x4ae   :  { %v1375_v4 = vadd.f32 %v1374_v58, %v1286_v3  ;;  %v1298_v3 = vpop.f32.mrf.mxu1 }
 0x4af   :  { %v3093_v47 = vpop.f32.mrf.mxu3 }
 0x4b0   :  { %v1423_v23 = vmax.f32 %v1375_v4, 0.0 }
 0x4b2   :  { %v1444_v12 = vpack.c.bf16 %v1423_v23, %v1422_v30 }
 0x4b4   :  { %1572 = vmatmul.bf16.gmra.mxu3 %v1444_v12 }
 0x4b5   :  { %v1377_v54 = vpop.f32.mrf.mxu2 }
 0x4b6   :  { %v1378_v19 = vadd.f32 %v1377_v54, %v1289_v15  ;;  %v1300_v15 = vpop.f32.mrf.mxu1 }
 0x4b7   :  { %v3097_v6 = vpop.f32.mrf.mxu3  ;;  %v1301_v55 = vadd.f32 %v3053_v9, %v1300_v15 }
 0x4b8   :  { %v1424_v28 = vmax.f32 %v1378_v19, 0.0 }
 0x4bd   :  { %v1379_v56 = vpop.f32.mrf.mxu2 }
 0x4be   :  { %v1380_v45 = vadd.f32 %v1379_v56, %v1291_v42 }
 0x4bf   :  { %v3101_v38 = vpop.f32.mrf.mxu3 }
 0x4c0   :  { %v1425_v22 = vmax.f32 %v1380_v45, 0.0  ;;  %v1605_v57 = vpack.c.bf16 %v3101_v38, %v3097_v6  ;;  %v1299_v45 = vadd.f32 %v3053_v9, %v1298_v3 }
 0x4c2   :  { %v1445_v62 = vpack.c.bf16 %v1425_v22, %v1424_v28  ;;  %v1303_v28 = vpop.f32.mrf.mxu1 }
 0x4c4   :  { %1577 = vmatmul.bf16.gmra.mxu3 %v1445_v62 }
 0x4c5   :  { %v1382_v43 = vpop.f32.mrf.mxu2 }
 0x4c6   :  { %v1383_v60 = vadd.f32 %v1382_v43, %v1294_v40 }
 0x4c7   :  { %v3105_v21 = vpop.f32.mrf.mxu3 }
 0x4c8   :  { %v1426_v23 = vmax.f32 %v1383_v60, 0.0 }
 0x4cd   :  { %v1384_v58 = vpop.f32.mrf.mxu2 }
 0x4ce   :  { %v1385_v4 = vadd.f32 %v1384_v58, %v1296_v48  ;;  %v1305_v58 = vpop.f32.mrf.mxu1 }
 0x4cf   :  { %v1540_v30 = vpop.f32.mrf.mxu3 }
 0x4d0   :  { %v1427_v12 = vmax.f32 %v1385_v4, 0.0  ;;  %v1606_v54 = vpack.c.bf16 %v1540_v30, %v3105_v21  ;;  %v1304_v30 = vadd.f32 %v3053_v9, %v1303_v28 }
 0x4d2   :  { %v1446_v42 = vpack.c.bf16 %v1427_v12, %v1426_v23  ;;  %v1306_v23 = vadd.f32 %v3053_v9, %v1305_v58 }
 0x4d4   :  { %1582 = vmatmul.bf16.gmra.mxu3 %v1446_v42 }
 0x4d5   :  { %v1387_v19 = vpop.f32.mrf.mxu2 }
 0x4d6   :  { %v1388_v22 = vadd.f32 %v1387_v19, %v1299_v45  ;;  %v1308_v20 = vpop.f32.mrf.mxu1 }
 0x4d7   :  { %v1543_v56 = vpop.f32.mrf.mxu3 }
 0x4d8   :  { %v1428_v40 = vmax.f32 %v1388_v22, 0.0 }
 0x4dd   :  { %v1389_v52 = vpop.f32.mrf.mxu2 }
 0x4de   :  { %v1390_v62 = vadd.f32 %v1389_v52, %v1301_v55 }
 0x4df   :  { %v1545_v43 = vpop.f32.mrf.mxu3 }
 0x4e0   :  { %v1429_v48 = vmax.f32 %v1390_v62, 0.0  ;;  %v1309_v62 = vadd.f32 %v3053_v9, %v1308_v20  ;;  %v1607_v20 = vpack.c.bf16 %v1545_v43, %v1543_v56 }
 0x4e2   :  { %v1447_v60 = vpack.c.bf16 %v1429_v48, %v1428_v40  ;;  %v1310_v40 = vpop.f32.mrf.mxu1 }
 0x4e3   :  { %v1311_v48 = vadd.f32 %v3053_v9, %v1310_v40 }
 0x4e4   :  { %1587 = vmatmul.bf16.gmra.mxu3 %v1447_v60 }
 0x4e5   :  { %v1392_v21 = vpop.f32.mrf.mxu2 }
 0x4e6   :  { %v1393_v12 = vadd.f32 %v1392_v21, %v1304_v30 }
 0x4e7   :  { %v1548_v4 = vpop.f32.mrf.mxu3 }
 0x4e8   :  { %v1430_v19 = vmax.f32 %v1393_v12, 0.0 }
 0x4ed   :  { %v1394_v3 = vpop.f32.mrf.mxu2 }
 0x4ee   :  { %v1395_v42 = vadd.f32 %v1394_v3, %v1306_v23 }
 0x4ef   :  { %v1550_v15 = vpop.f32.mrf.mxu3 }
 0x4f0   :  { %v1431_v45 = vmax.f32 %v1395_v42, 0.0 }
 0x4f2   :  { %v1448_v55 = vpack.c.bf16 %v1431_v45, %v1430_v19 }
 0x4f4   :  { %1592 = vmatmul.bf16.gmra.mxu3 %v1448_v55  ;;  %v1608_v55 = vpack.c.bf16 %v1550_v15, %v1548_v4 }
 0x4f5   :  { %v1397_v22 = vpop.f32.mrf.mxu2 }
 0x4f6   :  { %v1398_v60 = vadd.f32 %v1397_v22, %v1309_v62  ;;  %v3417_v62 = vpack.c.bf16 %v3093_v47, %v3089_v33 }
 0x4f7   :  { %v1553_v52 = vpop.f32.mrf.mxu3 }
 0x4f8   :  { %v1432_v21 = vmax.f32 %v1398_v60, 0.0 }
 0x4fd   :  { %v1399_v28 = vpop.f32.mrf.mxu2 }
 0x4fe   :  { %v1400_v35 = vadd.f32 %v1399_v28, %v1311_v48 }
 0x4ff   :  { %v1555_v58 = vpop.f32.mrf.mxu3 }
 0x500   :  { %v1433_v30 = vmax.f32 %v1400_v35, 0.0  ;;  %v1609_v19 = vpack.c.bf16 %v1555_v58, %v1553_v52  ;;  %v3418_v52 = vpack.c.bf16 %v3085_v0, %v3081_v61 }
 0x502   :  { %v1449_v23 = vpack.c.bf16 %v1433_v30, %v1432_v21 }
 0x504   :  { %1597 = vmatmul.bf16.gmra.mxu3 %v1449_v23 }
 0x507   :  { %v1558_v3 = vpop.f32.mrf.mxu3 }
 0x50f   :  { %v1560_v12 = vpop.f32.mrf.mxu3 }
 0x510   :  { %v1610_v42 = vpack.c.bf16 %v1560_v12, %v1558_v3 }
 0x512   :  { %1623 = vmatpush.bf16.msra.mxu0 %v1610_v42 }
 0x516   :  { %1624 = vmatpush.bf16.msra.mxu0 %v1609_v19 }
 0x517   :  { %v1563_v45 = vpop.f32.mrf.mxu3 }
 0x51a   :  { %1625 = vmatpush.bf16.msra.mxu0 %v1608_v55 }
 0x51e   :  { %1626 = vmatpush.bf16.msra.mxu0 %v1607_v20 }
 0x51f   :  { %v1565_v9 = vpop.f32.mrf.mxu3 }
 0x520   :  { %v1611_v22 = vpack.c.bf16 %v1565_v9, %v1563_v45 }
 0x522   :  { %1627 = vmatpush.bf16.msra.mxu0 %v1606_v54 }
 0x526   :  { %1628 = vmatpush.bf16.msra.mxu0 %v1605_v57 }
 0x527   :  { %v1568_v35 = vpop.f32.mrf.mxu3 }
 0x52a   :  { %1629 = vmatpush.bf16.msra.mxu0 %v3417_v62 }
 0x52e   :  { %1630 = vmatpush.bf16.msra.mxu0 %v3418_v52 }
 0x52f   :  { %v1570_v4 = vpop.f32.mrf.mxu3 }
 0x530   :  { %v1612_v15 = vpack.c.bf16 %v1570_v4, %v1568_v35 }
 0x531   :  { %1631 = vmatmul.bf16.vlgmr.msra.gmra.mxu0 %v2856_v14 }
 0x537   :  { %v1573_v56 = vpop.f32.mrf.mxu3 }
 0x53f   :  { %v1575_v43 = vpop.f32.mrf.mxu3 }
 0x540   :  { %v1613_v54 = vpack.c.bf16 %v1575_v43, %v1573_v56 }
 0x541   :  { %1636 = vmatmul.bf16.gmra.mxu0 %v2866_v32 }
 0x547   :  { %v1578_v6 = vpop.f32.mrf.mxu3 }
 0x54f   :  { %v1580_v38 = vpop.f32.mrf.mxu3 }
 0x550   :  { %v1614_v57 = vpack.c.bf16 %v1580_v38, %v1578_v6 }
 0x551   :  { %1641 = vmatmul.bf16.gmra.mxu0 %v2872_v41 }
 0x557   :  { %v1583_v33 = vpop.f32.mrf.mxu3 }
 0x55f   :  { %v1585_v47 = vpop.f32.mrf.mxu3 }
 0x560   :  { %v1615_v58 = vpack.c.bf16 %v1585_v47, %v1583_v33 }
 0x561   :  { %1646 = vmatmul.bf16.gmra.mxu0 %v2878_v59 }
 0x567   :  { %v1588_v61 = vpop.f32.mrf.mxu3 }
 0x56f   :  { %v1590_v0 = vpop.f32.mrf.mxu3 }
 0x570   :  { %v1616_v41 = vpack.c.bf16 %v1590_v0, %v1588_v61 }
 0x571   :  { %1651 = vmatmul.bf16.gmra.mxu0 %v2884_v8 }
 0x577   :  { %v1593_v40 = vpop.f32.mrf.mxu3 }
 0x57f   :  { %v1595_v14 = vpop.f32.mrf.mxu3 }
 0x580   :  { %v1617_v28 = vpack.c.bf16 %v1595_v14, %v1593_v40 }
 0x581   :  { %1656 = vmatmul.bf16.gmra.mxu0 %v2890_v25 }
 0x587   :  { %v1598_v48 = vpop.f32.mrf.mxu3 }
 0x58f   :  { %v1600_v60 = vpop.f32.mrf.mxu3 }
 0x590   :  { %v1618_v32 = vpack.c.bf16 %v1600_v60, %v1598_v48 }
 0x591   :  { %1661 = vmatmul.bf16.gmra.mxu0 %v2896_v44 }
 0x592   :  { %1712 = vmatpush.bf16.msra.mxu1 %v1618_v32 }
 0x596   :  { %1713 = vmatpush.bf16.msra.mxu1 %v1617_v28 }
 0x59a   :  { %1714 = vmatpush.bf16.msra.mxu1 %v1616_v41 }
 0x59e   :  { %1715 = vmatpush.bf16.msra.mxu1 %v1615_v58 }
 0x5a1   :  { %1666 = vmatmul.bf16.gmra.mxu0 %v2902_v11 }
 0x5a2   :  { %1716 = vmatpush.bf16.msra.mxu1 %v1614_v57 }
 0x5a6   :  { %1717 = vmatpush.bf16.msra.mxu1 %v1613_v54 }
 0x5aa   :  { %1718 = vmatpush.bf16.msra.mxu1 %v1612_v15 }
 0x5ae   :  { %1719 = vmatpush.bf16.msra.mxu1 %v1611_v22  ;;  %v1632_v59 = vpop.f32.mrf.mxu0 }
 0x5b1   :  { %1720 = vmatmul.bf16.vlgmr.msra.gmra.mxu1 %v2863_v10  ;;  %1671 = vmatmul.bf16.gmra.mxu0 %v2908_v13 }
 0x5b6   :  { %v1634_v10 = vpop.f32.mrf.mxu0 }
 0x5c1   :  { %1725 = vmatmul.bf16.gmra.mxu1 %v2869_v37  ;;  %1676 = vmatmul.bf16.gmra.mxu0 %v2920_v31  ;;  %v1637_v37 = vpop.f32.mrf.mxu0 }
 0x5c9   :  { %v1639_v8 = vpop.f32.mrf.mxu0 }
 0x5d1   :  { %1730 = vmatmul.bf16.gmra.mxu1 %v2875_v46  ;;  %1681 = vmatmul.bf16.gmra.mxu0 %v2928_v26  ;;  %v1642_v46 = vpop.f32.mrf.mxu0 }
 0x5d9   :  { %v1644_v25 = vpop.f32.mrf.mxu0 }
 0x5e1   :  { %1735 = vmatmul.bf16.gmra.mxu1 %v2881_v63  ;;  %1686 = vmatmul.bf16.gmra.mxu0 %v2936_v2  ;;  %v3150_v63 = vld [vmem:[%s3400_s7] ss:$0 sm:$0xff]  ;;  %v1647_v13 = vpop.f32.mrf.mxu0 }
 0x5e2   :  { %v1635_v31 = vadd.f32 %v3150_v63, %v1634_v10  ;;  %v1638_v30 = vadd.f32 %v3150_v63, %v1637_v37  ;;  %v1640_v20 = vadd.f32 %v3150_v63, %v1639_v8  ;;  %v1643_v4 = vadd.f32 %v3150_v63, %v1642_v46 }
 0x5e3   :  { %v1645_v33 = vadd.f32 %v3150_v63, %v1644_v25  ;;  %v1648_v60 = vadd.f32 %v3150_v63, %v1647_v13 }
 0x5f1   :  { %1740 = vmatmul.bf16.gmra.mxu1 %v2887_v16  ;;  %1691 = vmatmul.bf16.gmra.mxu0 %v2944_v50  ;;  %v1633_v16 = vadd.f32 %v3150_v63, %v1632_v59 }
 0x601   :  { %1745 = vmatmul.bf16.gmra.mxu1 %v2893_v29  ;;  %1696 = vmatmul.bf16.gmra.mxu0 %v2952_v51 }
 0x611   :  { %1750 = vmatmul.bf16.gmra.mxu1 %v2899_v36  ;;  %1701 = vmatmul.bf16.gmra.mxu0 %v2960_v34 }
 0x621   :  { %1755 = vmatmul.bf16.gmra.mxu1 %v2905_v1  ;;  %v3158_v1 = vld [vmem:[%s3401_s8] ss:$0 sm:$0xff] }
 0x62e   :  { %v1721_v29 = vpop.f32.mrf.mxu1 }
 0x62f   :  { %v1722_v44 = vadd.f32 %v1721_v29, %v1633_v16 }
 0x631   :  { %v1801_v36 = vmax.f32 %v1722_v44, 0.0  ;;  %1760 = vmatmul.bf16.gmra.mxu1 %v2911_v24  ;;  %v1649_v24 = vpop.f32.mrf.mxu0  ;;  %1706 = vmatmul.bf16.gmra.mxu0 %v2968_v53 }
 0x632   :  { %v1650_v46 = vadd.f32 %v3150_v63, %v1649_v24 }
 0x633   :  { %v1833_v11 = vpack.c.bf16 %v1801_v36, %v1801_v36 }
 0x635   :  { %v1865_v26 = vunpack.c.l.bf16 %v1833_v11 }
 0x636   :  { %v1723_v2 = vpop.f32.mrf.mxu1 }
 0x637   :  { %v1724_v50 = vadd.f32 %v1723_v2, %v1635_v31  ;;  %v1901_v51 = vmul.f32 %v3158_v1, %v1865_v26 }
 0x639   :  { %v1802_v34 = vmax.f32 %v1724_v50, 0.0  ;;  %1933 = vadd.xlane.f32.xlu0 %v1901_v51  ;;  %v1652_v55 = vpop.f32.mrf.mxu0 }
 0x63a   :  { %v1653_v11 = vadd.f32 %v3150_v63, %v1652_v55 }
 0x63b   :  { %v1834_v21 = vpack.c.bf16 %v1802_v34, %v1802_v34 }
 0x63d   :  { %v1866_v23 = vunpack.c.l.bf16 %v1834_v21 }
 0x63e   :  { %v1726_v3 = vpop.f32.mrf.mxu1 }
 0x63f   :  { %v1727_v12 = vadd.f32 %v1726_v3, %v1638_v30  ;;  %v1902_v42 = vmul.f32 %v3158_v1, %v1866_v23 }
 0x641   :  { %v1803_v19 = vmax.f32 %v1727_v12, 0.0  ;;  %1765 = vmatmul.bf16.gmra.mxu1 %v2924_v49  ;;  %1935 = vadd.xlane.f32.xlu0 %v1902_v42  ;;  %v1654_v15 = vpop.f32.mrf.mxu0 }
 0x642   :  { %v1655_v21 = vadd.f32 %v3150_v63, %v1654_v15 }
 0x643   :  { %v1835_v45 = vpack.c.bf16 %v1803_v19, %v1803_v19 }
 0x645   :  { %v1867_v9 = vunpack.c.l.bf16 %v1835_v45 }
 0x646   :  { %v1728_v22 = vpop.f32.mrf.mxu1 }
 0x647   :  { %v1729_v35 = vadd.f32 %v1728_v22, %v1640_v20  ;;  %v1903_v62 = vmul.f32 %v3158_v1, %v1867_v9 }
 0x649   :  { %v1804_v52 = vmax.f32 %v1729_v35, 0.0  ;;  %1937 = vadd.xlane.f32.xlu1 %v1903_v62  ;;  %v1657_v57 = vpop.f32.mrf.mxu0 }
 0x64a   :  { %v1658_v19 = vadd.f32 %v3150_v63, %v1657_v57 }
 0x64b   :  { %v1836_v53 = vpack.c.bf16 %v1804_v52, %v1804_v52 }
 0x64d   :  { %v1868_v56 = vunpack.c.l.bf16 %v1836_v53 }
 0x64e   :  { %v1731_v43 = vpop.f32.mrf.mxu1 }
 0x64f   :  { %v1732_v54 = vadd.f32 %v1731_v43, %v1643_v4  ;;  %v1904_v49 = vmul.f32 %v3158_v1, %v1868_v56 }
 0x651   :  { %v1805_v6 = vmax.f32 %v1732_v54, 0.0  ;;  %1770 = vmatmul.bf16.gmra.mxu1 %v2932_v39  ;;  %1939 = vadd.xlane.f32.xlu1 %v1904_v49  ;;  %v1659_v32 = vpop.f32.mrf.mxu0 }
 0x652   :  { %v1660_v52 = vadd.f32 %v3150_v63, %v1659_v32 }
 0x653   :  { %v1837_v38 = vpack.c.bf16 %v1805_v6, %v1805_v6 }
 0x655   :  { %v1869_v47 = vunpack.c.l.bf16 %v1837_v38 }
 0x656   :  { %v1733_v61 = vpop.f32.mrf.mxu1 }
 0x657   :  { %v1734_v0 = vadd.f32 %v1733_v61, %v1645_v33  ;;  %v1905_v40 = vmul.f32 %v3158_v1, %v1869_v47 }
 0x659   :  { %v1806_v14 = vmax.f32 %v1734_v0, 0.0  ;;  %1941 = vadd.xlane.f32.xlu2 %v1905_v40  ;;  %v1662_v37 = vpop.f32.mrf.mxu0 }
 0x65a   :  { %v1663_v54 = vadd.f32 %v3150_v63, %v1662_v37 }
 0x65b   :  { %v1838_v48 = vpack.c.bf16 %v1806_v14, %v1806_v14 }
 0x65d   :  { %v1870_v28 = vunpack.c.l.bf16 %v1838_v48 }
 0x65e   :  { %v1736_v41 = vpop.f32.mrf.mxu1 }
 0x65f   :  { %v1737_v58 = vadd.f32 %v1736_v41, %v1648_v60  ;;  %v1906_v39 = vmul.f32 %v3158_v1, %v1870_v28 }
 0x661   :  { %v1807_v59 = vmax.f32 %v1737_v58, 0.0  ;;  %1775 = vmatmul.bf16.gmra.mxu1 %v2940_v27  ;;  %1943 = vadd.xlane.f32.xlu2 %v1906_v39  ;;  %v1664_v26 = vpop.f32.mrf.mxu0 }
 0x662   :  { %v1665_v0 = vadd.f32 %v3150_v63, %v1664_v26 }
 0x663   :  { %v1839_v10 = vpack.c.bf16 %v1807_v59, %v1807_v59 }
 0x665   :  { %v1871_v8 = vunpack.c.l.bf16 %v1839_v10 }
 0x666   :  { %v1738_v16 = vpop.f32.mrf.mxu1 }
 0x667   :  { %v1739_v25 = vadd.f32 %v1738_v16, %v1650_v46  ;;  %v1907_v29 = vmul.f32 %v3158_v1, %v1871_v8 }
 0x669   :  { %v1808_v44 = vmax.f32 %v1739_v25, 0.0  ;;  %1945 = vadd.xlane.f32.xlu0 %v1907_v29  ;;  %v1667_v3 = vpop.f32.mrf.mxu0 }
 0x66a   :  { %v1668_v41 = vadd.f32 %v3150_v63, %v1667_v3 }
 0x66b   :  { %v1840_v36 = vpack.c.bf16 %v1808_v44, %v1808_v44 }
 0x66d   :  { %v1872_v13 = vunpack.c.l.bf16 %v1840_v36 }
 0x66e   :  { %v1741_v31 = vpop.f32.mrf.mxu1 }
 0x66f   :  { %v1742_v2 = vadd.f32 %v1741_v31, %v1653_v11  ;;  %v1908_v27 = vmul.f32 %v3158_v1, %v1872_v13  ;;  %v3198_v11 = vld [vmem:[#allocation2] ss:$0 sm:$0xff] }
 0x671   :  { %v1809_v50 = vmax.f32 %v1742_v2, 0.0  ;;  %1780 = vmatmul.bf16.gmra.mxu1 %v2948_v18  ;;  %1947 = vadd.xlane.f32.xlu1 %v1908_v27  ;;  %v1669_v22 = vpop.f32.mrf.mxu0 }
 0x672   :  { %v1670_v16 = vadd.f32 %v3150_v63, %v1669_v22 }
 0x673   :  { %v1841_v51 = vpack.c.bf16 %v1809_v50, %v1809_v50 }
 0x675   :  { %v1873_v34 = vunpack.c.l.bf16 %v1841_v51 }
 0x676   :  { %v1743_v30 = vpop.f32.mrf.mxu1 }
 0x677   :  { %v1744_v24 = vadd.f32 %v1743_v30, %v1655_v21  ;;  %v1909_v23 = vmul.f32 %v3158_v1, %v1873_v34 }
 0x679   :  { %v1810_v12 = vmax.f32 %v1744_v24, 0.0  ;;  %1949 = vadd.xlane.f32.xlu2 %v1909_v23  ;;  %v1672_v49 = vpop.f32.mrf.mxu0 }
 0x67a   :  { %v1673_v26 = vadd.f32 %v3150_v63, %v1672_v49 }
 0x67b   :  { %v1842_v42 = vpack.c.bf16 %v1810_v12, %v1810_v12 }
 0x67d   :  { %v1874_v45 = vunpack.c.l.bf16 %v1842_v42 }
 0x67e   :  { %v1746_v55 = vpop.f32.mrf.mxu1 }
 0x67f   :  { %v1747_v20 = vadd.f32 %v1746_v55, %v1658_v19  ;;  %v1910_v18 = vmul.f32 %v3158_v1, %v1874_v45 }
 0x681   :  { %v1811_v9 = vmax.f32 %v1747_v20, 0.0  ;;  %1785 = vmatmul.bf16.gmra.mxu1 %v2956_v7  ;;  %1951 = vadd.xlane.f32.xlu0 %v1910_v18  ;;  %v1674_v14 = vpop.f32.mrf.mxu0 }
 0x682   :  { %v1675_v12 = vadd.f32 %v3150_v63, %v1674_v14 }
 0x683   :  { %v1843_v35 = vpack.c.bf16 %v1811_v9, %v1811_v9 }
 0x685   :  { %v1875_v62 = vunpack.c.l.bf16 %v1843_v35 }
 0x686   :  { %v1748_v53 = vpop.f32.mrf.mxu1 }
 0x687   :  { %v1749_v4 = vadd.f32 %v1748_v53, %v1660_v52  ;;  %v1911_v15 = vmul.f32 %v3158_v1, %v1875_v62 }
 0x689   :  { %v1812_v56 = vmax.f32 %v1749_v4, 0.0  ;;  %1953 = vadd.xlane.f32.xlu1 %v1911_v15  ;;  %v1677_v10 = vpop.f32.mrf.mxu0 }
 0x68a   :  { %v1678_v9 = vadd.f32 %v3150_v63, %v1677_v10 }
 0x68b   :  { %v1844_v43 = vpack.c.bf16 %v1812_v56, %v1812_v56 }
 0x68d   :  { %v1876_v6 = vunpack.c.l.bf16 %v1844_v43 }
 0x68e   :  { %v1751_v38 = vpop.f32.mrf.mxu1 }
 0x68f   :  { %v1752_v57 = vadd.f32 %v1751_v38, %v1663_v54  ;;  %v1912_v7 = vmul.f32 %v3158_v1, %v1876_v6 }
 0x691   :  { %v1813_v33 = vmax.f32 %v1752_v57, 0.0  ;;  %1790 = vmatmul.bf16.gmra.mxu1 %v2964_v5  ;;  %1955 = vadd.xlane.f32.xlu2 %v1912_v7  ;;  %v1679_v13 = vpop.f32.mrf.mxu0 }
 0x692   :  { %v1680_v6 = vadd.f32 %v3150_v63, %v1679_v13 }
 0x693   :  { %v1845_v47 = vpack.c.bf16 %v1813_v33, %v1813_v33 }
 0x695   :  { %v1877_v61 = vunpack.c.l.bf16 %v1845_v47 }
 0x696   :  { %v1753_v40 = vpop.f32.mrf.mxu1 }
 0x697   :  { %v1754_v48 = vadd.f32 %v1753_v40, %v1665_v0  ;;  %v1913_v60 = vmul.f32 %v3158_v1, %v1877_v61 }
 0x699   :  { %v1814_v32 = vmax.f32 %v1754_v48, 0.0  ;;  %1957 = vadd.xlane.f32.xlu0 %v1913_v60  ;;  %v1682_v23 = vpop.f32.mrf.mxu0 }
 0x69a   :  { %v1683_v40 = vadd.f32 %v3150_v63, %v1682_v23 }
 0x69b   :  { %v1846_v28 = vpack.c.bf16 %v1814_v32, %v1814_v32 }
 0x69d   :  { %v1878_v58 = vunpack.c.l.bf16 %v1846_v28 }
 0x69e   :  { %v1756_v39 = vpop.f32.mrf.mxu1 }
 0x69f   :  { %v1757_v59 = vadd.f32 %v1756_v39, %v1668_v41  ;;  %v1914_v5 = vmul.f32 %v3158_v1, %v1878_v58 }
 0x6a1   :  { %v1815_v37 = vmax.f32 %v1757_v59, 0.0  ;;  %1795 = vmatmul.bf16.gmra.mxu1 %v2972_v17  ;;  %1959 = vadd.xlane.f32.xlu1 %v1914_v5  ;;  %v1684_v53 = vpop.f32.mrf.mxu0 }
 0x6a3   :  { %v1847_v8 = vpack.c.bf16 %v1815_v37, %v1815_v37  ;;  %v1685_v37 = vadd.f32 %v3150_v63, %v1684_v53 }
 0x6a5   :  { %v1879_v46 = vunpack.c.l.bf16 %v1847_v8 }
 0x6a6   :  { %v1758_v25 = vpop.f32.mrf.mxu1 }
 0x6a7   :  { %v1759_v29 = vadd.f32 %v1758_v25, %v1670_v16  ;;  %v1915_v44 = vmul.f32 %v3158_v1, %v1879_v46 }
 0x6a9   :  { %v1816_v36 = vmax.f32 %v1759_v29, 0.0  ;;  %1961 = vadd.xlane.f32.xlu2 %v1915_v44  ;;  %v1687_v47 = vpop.f32.mrf.mxu0 }
 0x6ab   :  { %v1848_v31 = vpack.c.bf16 %v1816_v36, %v1816_v36  ;;  %v1688_v36 = vadd.f32 %v3150_v63, %v1687_v47 }
 0x6ac   :  { %v1934_v2 = vpop.xlane.xlu0 %1933 }
 0x6ad   :  { %v1880_v17 = vunpack.c.l.bf16 %v1848_v31  ;;  %v2001_v27 = vadd.f32 %v3198_v11, %v1934_v2 }
 0x6ae   :  { %v1761_v50 = vpop.f32.mrf.mxu1 }
 0x6af   :  { %2034 = vst.msk [vmem:[%s3403_s10] sm:$0xff] %vm2033_vm0, %v2001_v27  ;;  %v1762_v51 = vadd.f32 %v1761_v50, %v1673_v26  ;;  %v1916_v34 = vmul.f32 %v3158_v1, %v1880_v17 }
 0x6b1   :  { %v1817_v21 = vmax.f32 %v1762_v51, 0.0  ;;  %1963 = vadd.xlane.f32.xlu0 %v1916_v34  ;;  %v1689_v39 = vpop.f32.mrf.mxu0 }
 0x6b3   :  { %v1849_v30 = vpack.c.bf16 %v1817_v21, %v1817_v21 }
 0x6b4   :  { %v1936_v24 = vpop.xlane.xlu0 %1935 }
 0x6b5   :  { %v1881_v3 = vunpack.c.l.bf16 %v1849_v30  ;;  %v2002_v42 = vadd.f32 %v3198_v11, %v1936_v24  ;;  %v1690_v24 = vadd.f32 %v3150_v63, %v1689_v39 }
 0x6b6   :  { %v1763_v19 = vpop.f32.mrf.mxu1 }
 0x6b7   :  { %2035 = vst.msk [vmem:[%s3403_s10 + $0x8] sm:$0xff] %vm2033_vm0, %v2002_v42  ;;  %v1764_v45 = vadd.f32 %v1763_v19, %v1675_v12  ;;  %v1917_v55 = vmul.f32 %v3158_v1, %v1881_v3 }
 0x6b9   :  { %v1818_v20 = vmax.f32 %v1764_v45, 0.0  ;;  %1965 = vadd.xlane.f32.xlu1 %v1917_v55  ;;  %v1692_v31 = vpop.f32.mrf.mxu0 }
 0x6bb   :  { %v1850_v18 = vpack.c.bf16 %v1818_v20, %v1818_v20  ;;  %v1693_v20 = vadd.f32 %v3150_v63, %v1692_v31 }
 0x6bc   :  { %v1938_v22 = vpop.xlane.xlu1 %1937 }
 0x6bd   :  { %v1882_v35 = vunpack.c.l.bf16 %v1850_v18  ;;  %v2003_v62 = vadd.f32 %v3198_v11, %v1938_v22 }
 0x6be   :  { %v1766_v52 = vpop.f32.mrf.mxu1 }
 0x6bf   :  { %2036 = vst.msk [vmem:[%s3403_s10 + $0x10] sm:$0xff] %vm2033_vm0, %v2003_v62  ;;  %v1767_v4 = vadd.f32 %v1766_v52, %v1678_v9  ;;  %v1918_v15 = vmul.f32 %v3158_v1, %v1882_v35 }
 0x6c1   :  { %v1819_v56 = vmax.f32 %v1767_v4, 0.0  ;;  %1967 = vadd.xlane.f32.xlu2 %v1918_v15  ;;  %v1694_v12 = vpop.f32.mrf.mxu0 }
 0x6c3   :  { %v1851_v43 = vpack.c.bf16 %v1819_v56, %v1819_v56 }
 0x6c4   :  { %v1940_v54 = vpop.xlane.xlu1 %1939 }
 0x6c5   :  { %v1883_v49 = vunpack.c.l.bf16 %v1851_v43  ;;  %v2004_v38 = vadd.f32 %v3198_v11, %v1940_v54  ;;  %v1695_v54 = vadd.f32 %v3150_v63, %v1694_v12 }
 0x6c6   :  { %v1768_v57 = vpop.f32.mrf.mxu1 }
 0x6c7   :  { %2037 = vst.msk [vmem:[%s3403_s10 + $0x18] sm:$0xff] %vm2033_vm0, %v2004_v38  ;;  %v1769_v7 = vadd.f32 %v1768_v57, %v1680_v6  ;;  %v1919_v33 = vmul.f32 %v3158_v1, %v1883_v49 }
 0x6c9   :  { %v1820_v61 = vmax.f32 %v1769_v7, 0.0  ;;  %1969 = vadd.xlane.f32.xlu0 %v1919_v33  ;;  %v1697_v53 = vpop.f32.mrf.mxu0 }
 0x6cb   :  { %v1852_v0 = vpack.c.bf16 %v1820_v61, %v1820_v61  ;;  %v1698_v61 = vadd.f32 %v3150_v63, %v1697_v53 }
 0x6cc   :  { %v1942_v14 = vpop.xlane.xlu2 %1941 }
 0x6cd   :  { %v1884_v48 = vunpack.c.l.bf16 %v1852_v0  ;;  %v2005_v60 = vadd.f32 %v3198_v11, %v1942_v14 }
 0x6ce   :  { %v1771_v32 = vpop.f32.mrf.mxu1 }
 0x6cf   :  { %2038 = vst.msk [vmem:[%s3403_s10 + $0x20] sm:$0xff] %vm2033_vm0, %v2005_v60  ;;  %v1772_v28 = vadd.f32 %v1771_v32, %v1683_v40  ;;  %v1920_v41 = vmul.f32 %v3158_v1, %v1884_v48 }
 0x6d1   :  { %v1821_v58 = vmax.f32 %v1772_v28, 0.0  ;;  %1971 = vadd.xlane.f32.xlu1 %v1920_v41  ;;  %v1699_v33 = vpop.f32.mrf.mxu0 }
 0x6d3   :  { %v1853_v59 = vpack.c.bf16 %v1821_v58, %v1821_v58 }
 0x6d4   :  { %v1944_v5 = vpop.xlane.xlu2 %1943 }
 0x6d5   :  { %v1885_v10 = vunpack.c.l.bf16 %v1853_v59  ;;  %v2006_v8 = vadd.f32 %v3198_v11, %v1944_v5  ;;  %v1700_v5 = vadd.f32 %v3150_v63, %v1699_v33 }
 0x6d6   :  { %v1773_v46 = vpop.f32.mrf.mxu1 }
 0x6d7   :  { %2039 = vst.msk [vmem:[%s3403_s10 + $0x28] sm:$0xff] %vm2033_vm0, %v2006_v8  ;;  %v1774_v16 = vadd.f32 %v1773_v46, %v1685_v37  ;;  %v1921_v25 = vmul.f32 %v3158_v1, %v1885_v10 }
 0x6d9   :  { %v1822_v29 = vmax.f32 %v1774_v16, 0.0  ;;  %1973 = vadd.xlane.f32.xlu2 %v1921_v25  ;;  %v1702_v39 = vpop.f32.mrf.mxu0 }
 0x6db   :  { %v1854_v44 = vpack.c.bf16 %v1822_v29, %v1822_v29  ;;  %v1703_v29 = vadd.f32 %v3150_v63, %v1702_v39 }
 0x6dc   :  { %v1946_v13 = vpop.xlane.xlu0 %1945 }
 0x6dd   :  { %v1886_v26 = vunpack.c.l.bf16 %v1854_v44  ;;  %v2007_v2 = vadd.f32 %v3198_v11, %v1946_v13 }
 0x6de   :  { %v1776_v17 = vpop.f32.mrf.mxu1 }
 0x6df   :  { %v1777_v27 = vadd.f32 %v1776_v17, %v1688_v36  ;;  %v1922_v50 = vmul.f32 %v3158_v1, %v1886_v26  ;;  %2040 = vst.msk [vmem:[%s3403_s10 + $0x30] sm:$0xff] %vm2033_vm0, %v2007_v2 }
 0x6e1   :  { %v1823_v51 = vmax.f32 %v1777_v27, 0.0  ;;  %1975 = vadd.xlane.f32.xlu0 %v1922_v50  ;;  %v1704_v26 = vpop.f32.mrf.mxu0 }
 0x6e3   :  { %v1855_v34 = vpack.c.bf16 %v1823_v51, %v1823_v51 }
 0x6e4   :  { %v1948_v21 = vpop.xlane.xlu1 %1947 }
 0x6e5   :  { %v1887_v30 = vunpack.c.l.bf16 %v1855_v34  ;;  %v2008_v23 = vadd.f32 %v3198_v11, %v1948_v21  ;;  %v1705_v21 = vadd.f32 %v3150_v63, %v1704_v26 }
 0x6e6   :  { %v1778_v3 = vpop.f32.mrf.mxu1 }
 0x6e7   :  { %2041 = vst.msk [vmem:[%s3403_s10 + $0x38] sm:$0xff] %vm2033_vm0, %v2008_v23  ;;  %v1779_v42 = vadd.f32 %v1778_v3, %v1690_v24  ;;  %v1923_v19 = vmul.f32 %v3158_v1, %v1887_v30 }
 0x6e9   :  { %v1824_v45 = vmax.f32 %v1779_v42, 0.0  ;;  %1977 = vadd.xlane.f32.xlu1 %v1923_v19  ;;  %v1707_v12 = vpop.f32.mrf.mxu0 }
 0x6eb   :  { %v1856_v55 = vpack.c.bf16 %v1824_v45, %v1824_v45  ;;  %v1708_v45 = vadd.f32 %v3150_v63, %v1707_v12 }
 0x6ec   :  { %v1950_v18 = vpop.xlane.xlu2 %1949 }
 0x6ed   :  { %v1888_v9 = vunpack.c.l.bf16 %v1856_v55  ;;  %v2009_v22 = vadd.f32 %v3198_v11, %v1950_v18 }
 0x6ee   :  { %v1781_v35 = vpop.f32.mrf.mxu1 }
 0x6ef   :  { %v1782_v62 = vadd.f32 %v1781_v35, %v1693_v20  ;;  %v1924_v52 = vmul.f32 %v3158_v1, %v1888_v9  ;;  %2042 = vst.msk [vmem:[%s3403_s10 + $0x40] sm:$0xff] %vm2033_vm0, %v2009_v22 }
 0x6f1   :  { %v1825_v4 = vmax.f32 %v1782_v62, 0.0  ;;  %1979 = vadd.xlane.f32.xlu2 %v1924_v52  ;;  %v1709_v52 = vpop.f32.mrf.mxu0 }
 0x6f3   :  { %v1857_v15 = vpack.c.bf16 %v1825_v4, %v1825_v4 }
 0x6f4   :  { %v1952_v56 = vpop.xlane.xlu0 %1951 }
 0x6f5   :  { %v1889_v43 = vunpack.c.l.bf16 %v1857_v15  ;;  %v2010_v49 = vadd.f32 %v3198_v11, %v1952_v56  ;;  %v1710_v56 = vadd.f32 %v3150_v63, %v1709_v52 }
 0x6f6   :  { %v1783_v6 = vpop.f32.mrf.mxu1 }
 0x6f7   :  { %2043 = vst.msk [vmem:[%s3403_s10 + $0x48] sm:$0xff] %vm2033_vm0, %v2010_v49  ;;  %v1784_v38 = vadd.f32 %v1783_v6, %v1695_v54  ;;  %v1925_v57 = vmul.f32 %v3158_v1, %v1889_v43 }
 0x6f9   :  { %v1826_v7 = vmax.f32 %v1784_v38, 0.0  ;;  %1981 = vadd.xlane.f32.xlu0 %v1925_v57 }
 0x6fb   :  { %v1858_v47 = vpack.c.bf16 %v1826_v7, %v1826_v7 }
 0x6fc   :  { %v1954_v0 = vpop.xlane.xlu1 %1953 }
 0x6fd   :  { %v1890_v40 = vunpack.c.l.bf16 %v1858_v47  ;;  %v2011_v14 = vadd.f32 %v3198_v11, %v1954_v0 }
 0x6fe   :  { %v1786_v48 = vpop.f32.mrf.mxu1 }
 0x6ff   :  { %v1787_v60 = vadd.f32 %v1786_v48, %v1698_v61  ;;  %v1926_v32 = vmul.f32 %v3158_v1, %v1890_v40  ;;  %2044 = vst.msk [vmem:[%s3403_s10 + $0x50] sm:$0xff] %vm2033_vm0, %v2011_v14 }
 0x701   :  { %v1827_v28 = vmax.f32 %v1787_v60, 0.0  ;;  %1983 = vadd.xlane.f32.xlu1 %v1926_v32 }
 0x703   :  { %v1859_v41 = vpack.c.bf16 %v1827_v28, %v1827_v28 }
 0x704   :  { %v1956_v58 = vpop.xlane.xlu2 %1955 }
 0x705   :  { %v1891_v59 = vunpack.c.l.bf16 %v1859_v41  ;;  %v2012_v10 = vadd.f32 %v3198_v11, %v1956_v58 }
 0x706   :  { %v1788_v37 = vpop.f32.mrf.mxu1 }
 0x707   :  { %2045 = vst.msk [vmem:[%s3403_s10 + $0x58] sm:$0xff] %vm2033_vm0, %v2012_v10  ;;  %v1789_v8 = vadd.f32 %v1788_v37, %v1700_v5  ;;  %v1927_v46 = vmul.f32 %v3158_v1, %v1891_v59 }
 0x709   :  { %v1828_v16 = vmax.f32 %v1789_v8, 0.0  ;;  %1985 = vadd.xlane.f32.xlu2 %v1927_v46 }
 0x70b   :  { %v1860_v25 = vpack.c.bf16 %v1828_v16, %v1828_v16 }
 0x70c   :  { %v1958_v44 = vpop.xlane.xlu0 %1957 }
 0x70d   :  { %v1892_v36 = vunpack.c.l.bf16 %v1860_v25  ;;  %v2013_v13 = vadd.f32 %v3198_v11, %v1958_v44 }
 0x70e   :  { %v1791_v31 = vpop.f32.mrf.mxu1 }
 0x70f   :  { %v1792_v2 = vadd.f32 %v1791_v31, %v1703_v29  ;;  %v1928_v17 = vmul.f32 %v3158_v1, %v1892_v36  ;;  %2046 = vst.msk [vmem:[%s3403_s10 + $0x60] sm:$0xff] %vm2033_vm0, %v2013_v13 }
 0x711   :  { %v1829_v27 = vmax.f32 %v1792_v2, 0.0  ;;  %1987 = vadd.xlane.f32.xlu0 %v1928_v17 }
 0x713   :  { %v1861_v50 = vpack.c.bf16 %v1829_v27, %v1829_v27 }
 0x714   :  { %v1960_v51 = vpop.xlane.xlu1 %1959 }
 0x715   :  { %v1893_v34 = vunpack.c.l.bf16 %v1861_v50  ;;  %v2014_v30 = vadd.f32 %v3198_v11, %v1960_v51 }
 0x716   :  { %v1793_v24 = vpop.f32.mrf.mxu1 }
 0x717   :  { %2047 = vst.msk [vmem:[%s3403_s10 + $0x68] sm:$0xff] %vm2033_vm0, %v2014_v30  ;;  %v1794_v23 = vadd.f32 %v1793_v24, %v1705_v21  ;;  %v1929_v3 = vmul.f32 %v3158_v1, %v1893_v34 }
 0x719   :  { %v1830_v42 = vmax.f32 %v1794_v23, 0.0  ;;  %1989 = vadd.xlane.f32.xlu1 %v1929_v3 }
 0x71b   :  { %v1862_v19 = vpack.c.bf16 %v1830_v42, %v1830_v42 }
 0x71c   :  { %v1962_v55 = vpop.xlane.xlu2 %1961 }
 0x71d   :  { %v1894_v20 = vunpack.c.l.bf16 %v1862_v19  ;;  %v2015_v18 = vadd.f32 %v3198_v11, %v1962_v55 }
 0x71e   :  { %v1796_v9 = vpop.f32.mrf.mxu1 }
 0x71f   :  { %v1797_v22 = vadd.f32 %v1796_v9, %v1708_v45  ;;  %v1930_v35 = vmul.f32 %v3158_v1, %v1894_v20  ;;  %2048 = vst.msk [vmem:[%s3403_s10 + $0x70] sm:$0xff] %vm2033_vm0, %v2015_v18 }
 0x721   :  { %v1831_v62 = vmax.f32 %v1797_v22, 0.0  ;;  %1991 = vadd.xlane.f32.xlu2 %v1930_v35 }
 0x723   :  { %v1863_v53 = vpack.c.bf16 %v1831_v62, %v1831_v62 }
 0x724   :  { %v1964_v4 = vpop.xlane.xlu0 %1963 }
 0x725   :  { %v1895_v15 = vunpack.c.l.bf16 %v1863_v53  ;;  %v2016_v43 = vadd.f32 %v3198_v11, %v1964_v4 }
 0x726   :  { %v1798_v54 = vpop.f32.mrf.mxu1 }
 0x727   :  { %2049 = vst.msk [vmem:[%s3403_s10 + $0x78] sm:$0xff] %vm2033_vm0, %v2016_v43  ;;  %v1799_v49 = vadd.f32 %v1798_v54, %v1710_v56  ;;  %v1931_v6 = vmul.f32 %v3158_v1, %v1895_v15 }
 0x729   :  { %v1832_v38 = vmax.f32 %v1799_v49, 0.0  ;;  %1993 = vadd.xlane.f32.xlu0 %v1931_v6 }
 0x72b   :  { %v1864_v57 = vpack.c.bf16 %v1832_v38, %v1832_v38 }
 0x72c   :  { %v1966_v7 = vpop.xlane.xlu1 %1965 }
 0x72d   :  { %v1896_v33 = vunpack.c.l.bf16 %v1864_v57  ;;  %v2017_v47 = vadd.f32 %v3198_v11, %v1966_v7 }
 0x72f   :  { %v1932_v63 = vmul.f32 %v3158_v1, %v1896_v33  ;;  %2050 = vst.msk [vmem:[%s3403_s10 + $0x80] sm:$0xff] %vm2033_vm0, %v2017_v47 }
 0x731   :  { %1995 = vadd.xlane.f32.xlu1 %v1932_v63 }
 0x734   :  { %v1968_v61 = vpop.xlane.xlu2 %1967 }
 0x735   :  { %v2018_v0 = vadd.f32 %v3198_v11, %v1968_v61 }
 0x737   :  { %2051 = vst.msk [vmem:[%s3403_s10 + $0x88] sm:$0xff] %vm2033_vm0, %v2018_v0 }
 0x73c   :  { %v1970_v40 = vpop.xlane.xlu0 %1969 }
 0x73d   :  { %v2019_v14 = vadd.f32 %v3198_v11, %v1970_v40 }
 0x73f   :  { %2052 = vst.msk [vmem:[%s3403_s10 + $0x90] sm:$0xff] %vm2033_vm0, %v2019_v14 }
 0x744   :  { %v1972_v1 = vpop.xlane.xlu1 %1971 }
 0x745   :  { %v2020_v48 = vadd.f32 %v3198_v11, %v1972_v1 }
 0x747   :  { %2053 = vst.msk [vmem:[%s3403_s10 + $0x98] sm:$0xff] %vm2033_vm0, %v2020_v48 }
 0x74c   :  { %v1974_v60 = vpop.xlane.xlu2 %1973 }
 0x74d   :  { %v2021_v32 = vadd.f32 %v3198_v11, %v1974_v60 }
 0x74f   :  { %2054 = vst.msk [vmem:[%s3403_s10 + $0xa0] sm:$0xff] %vm2033_vm0, %v2021_v32 }
 0x754   :  { %v1976_v28 = vpop.xlane.xlu0 %1975 }
 0x755   :  { %v2022_v41 = vadd.f32 %v3198_v11, %v1976_v28 }
 0x757   :  { %2055 = vst.msk [vmem:[%s3403_s10 + $0xa8] sm:$0xff] %vm2033_vm0, %v2022_v41 }
 0x75c   :  { %v1978_v58 = vpop.xlane.xlu1 %1977 }
 0x75d   :  { %v2023_v39 = vadd.f32 %v3198_v11, %v1978_v58 }
 0x75f   :  { %2056 = vst.msk [vmem:[%s3403_s10 + $0xb0] sm:$0xff] %vm2033_vm0, %v2023_v39 }
 0x764   :  { %v1980_v59 = vpop.xlane.xlu2 %1979 }
 0x765   :  { %v2024_v5 = vadd.f32 %v3198_v11, %v1980_v59 }
 0x767   :  { %2057 = vst.msk [vmem:[%s3403_s10 + $0xb8] sm:$0xff] %vm2033_vm0, %v2024_v5 }
 0x76c   :  { %v1982_v10 = vpop.xlane.xlu0 %1981 }
 0x76d   :  { %v2025_v37 = vadd.f32 %v3198_v11, %v1982_v10 }
 0x76f   :  { %2058 = vst.msk [vmem:[%s3403_s10 + $0xc0] sm:$0xff] %vm2033_vm0, %v2025_v37 }
 0x774   :  { %v1984_v8 = vpop.xlane.xlu1 %1983 }
 0x775   :  { %v2026_v46 = vadd.f32 %v3198_v11, %v1984_v8 }
 0x777   :  { %2059 = vst.msk [vmem:[%s3403_s10 + $0xc8] sm:$0xff] %vm2033_vm0, %v2026_v46 }
 0x77c   :  { %v1986_v16 = vpop.xlane.xlu2 %1985 }
 0x77d   :  { %v2027_v25 = vadd.f32 %v3198_v11, %v1986_v16 }
 0x77f   :  { %2060 = vst.msk [vmem:[%s3403_s10 + $0xd0] sm:$0xff] %vm2033_vm0, %v2027_v25 }
 0x784   :  { %v1988_v29 = vpop.xlane.xlu0 %1987 }
 0x785   :  { %v2028_v44 = vadd.f32 %v3198_v11, %v1988_v29 }
 0x787   :  { %2061 = vst.msk [vmem:[%s3403_s10 + $0xd8] sm:$0xff] %vm2033_vm0, %v2028_v44 }
 0x78c   :  { %v1990_v36 = vpop.xlane.xlu1 %1989 }
 0x78d   :  { %v2029_v13 = vadd.f32 %v3198_v11, %v1990_v36 }
 0x78f   :  { %2062 = vst.msk [vmem:[%s3403_s10 + $0xe0] sm:$0xff] %vm2033_vm0, %v2029_v13 }
 0x794   :  { %v1992_v31 = vpop.xlane.xlu2 %1991 }
 0x795   :  { %v2030_v26 = vadd.f32 %v3198_v11, %v1992_v31 }
 0x797   :  { %2063 = vst.msk [vmem:[%s3403_s10 + $0xe8] sm:$0xff] %vm2033_vm0, %v2030_v26 }
 0x79c   :  { %v1994_v2 = vpop.xlane.xlu0 %1993 }
 0x79d   :  { %v2031_v17 = vadd.f32 %v3198_v11, %v1994_v2 }
 0x79f   :  { %2064 = vst.msk [vmem:[%s3403_s10 + $0xf0] sm:$0xff] %vm2033_vm0, %v2031_v17 }
 0x7a4   :  { %v1996_v27 = vpop.xlane.xlu1 %1995 }
 0x7a5   :  { %v2032_v50 = vadd.f32 %v3198_v11, %v1996_v27 }
 0x7a7   :  { %2065 = vst.msk [vmem:[%s3403_s10 + $0xf8] sm:$0xff] %vm2033_vm0, %v2032_v50 }
 0x7a8   :  { %2070 = vsyncpa [#allocation4], 1 }
 0x7a9   :  { %2071 = vsyncpa [#allocation6], 1 }
 0x7aa   :  { %2072 = vsyncpa [#allocation9], 1 }

</bundles_post_ra>
